<compile_context>
chip_gen: v7x
topology: tpu7x:2x2x1
jax: 0.10.0
libtpu: 0.0.40
codegen_flags: <defaults>
</compile_context>

<pallas_src>
import numpy as np
import jax
import jax.numpy as jnp
from jax import lax
from jax.experimental import pallas as pl
from jax.experimental.pallas import tpu as pltpu


def _tap_offsets_and_masks(S, K, P):
    """Flat lane offset and (K^3, S^3) validity mask for every conv tap."""
    V = S ** 3
    d, h, w = np.meshgrid(np.arange(S), np.arange(S), np.arange(S), indexing="ij")
    d, h, w = d.reshape(-1), h.reshape(-1), w.reshape(-1)
    offs = []
    masks = np.zeros((K * K * K, V), np.float32)
    t = 0
    for kd in range(K):
        for kh in range(K):
            for kw in range(K):
                dd, dh, dw = kd - P, kh - P, kw - P
                offs.append(dd * S * S + dh * S + dw)
                valid = ((d + dd >= 0) & (d + dd < S) &
                         (h + dh >= 0) & (h + dh < S) &
                         (w + dw >= 0) & (w + dw < S))
                masks[t] = valid.astype(np.float32)
                t += 1
    return tuple(offs), masks


def _make_voxel_conv_kernel(S, Cin, Cout, K, offs, lane_pad):
    """Per-batch Conv3d kernel (static shapes / tap offsets closed over)."""
    V = S ** 3
    Vp = V + 2 * lane_pad
    n_taps = K * K * K

    def kernel(x_ref, w_ref, b_ref, m_ref, o_ref, xp_ref, col_ref):
        # x_ref  : (1, Cin, V)      per-batch input, channels-first, lane-dense
        # w_ref  : (Cout, K^3*Cin)  weights, tap-major / channel-minor columns
        # b_ref  : (Cout, 1)        bias
        # m_ref  : (K^3, V)         per-tap boundary masks (0/1 float32)
        # o_ref  : (1, Cout, V)     per-batch output (lane-dense)
        # xp_ref : (Cin, Vp)        scratch: lane-padded copy of x
        # col_ref: (K^3*Cin, V)     scratch: im2col matrix

        # Build the lane-padded copy (aligned stores: lane_pad and V are
        # multiples of 128 here).
        zeros_halo = jnp.zeros((Cin, lane_pad), jnp.float32)
        xp_ref[:, :lane_pad] = zeros_halo
        xp_ref[:, lane_pad + V:] = zeros_halo
        xp_ref[:, lane_pad:lane_pad + V] = x_ref[0].astype(jnp.float32)

        # im2col: 27 shifted-window loads (lane shifts over lane-dense data),
        # masked at cube boundaries, stored into the col scratch.
        for t in range(n_taps):
            off = offs[t]
            start = lane_pad + off
            xs = xp_ref[:, start:start + V]                 # (Cin, V)
            if off != 0:                                    # center tap needs no mask
                xs = xs * m_ref[t:t + 1, :]                 # zero out-of-cube voxels
            col_ref[t * Cin:(t + 1) * Cin, :] = xs

        # Single fused contraction on the MXU: (Cout, K^3*Cin) @ (K^3*Cin, V).
        acc = lax.dot_general(
            w_ref[...].astype(jnp.float32), col_ref[...],
            dimension_numbers=(((1,), (0,)), ((), ())),
            preferred_element_type=jnp.float32)             # (Cout, V)
        acc = acc + b_ref[...].astype(jnp.float32)          # lane-broadcast bias
        o_ref[0] = acc.astype(o_ref.dtype)                  # lane-dense store

    return kernel


def voxel_conv(x, weight, bias, padding=1):
    """x: (B, C, V) with V = S**3. weight: (Cout, Cin, K, K, K). bias: (Cout,)."""
    B, Cin, V = x.shape
    # integer cube root (robust to float error)
    S = int(round(V ** (1.0 / 3.0)))
    if S ** 3 != V:
        for cand in (S - 1, S + 1):
            if cand > 0 and cand ** 3 == V:
                S = cand
    assert S ** 3 == V, "last dim must be a perfect cube"

    Cout, Cin_w, K, Kh, Kw = weight.shape
    assert (Cin_w, Kh, Kw) == (Cin, K, K)
    assert K == 2 * padding + 1, "'same' conv required so output views back to x.shape"
    assert Cout == Cin, "out_c must equal in_c for the module's .view(x_s) to round-trip"

    K3 = K * K * K
    K3C = K3 * Cin
    offs, masks_np = _tap_offsets_and_masks(S, K, padding)

    # Lane padding rounded up to a multiple of 128 so the x -> scratch copy is
    # a fully aligned store; shifted-window loads may be lane-unaligned.
    max_off = padding * (S * S + S + 1)
    lane_pad = ((max_off + 127) // 128) * 128
    Vp = V + 2 * lane_pad

    # Tiny parameter re-layouts only (Cout x K^3*Cin and Cout x 1); the
    # activation tensor x is passed to the kernel untouched.
    w2 = jnp.transpose(weight, (0, 2, 3, 4, 1)).reshape(Cout, K3C)
    b2 = bias.reshape(Cout, 1)
    masks = jnp.asarray(masks_np)                            # (K^3, V) constant

    kernel = _make_voxel_conv_kernel(S, Cin, Cout, K, offs, lane_pad)
    out = pl.pallas_call(
        kernel,
        out_shape=jax.ShapeDtypeStruct((B, Cout, V), x.dtype),
        grid=(B,),
        in_specs=[
            pl.BlockSpec((1, Cin, V), lambda b: (b, 0, 0)),
            pl.BlockSpec((Cout, K3C), lambda b: (0, 0)),
            pl.BlockSpec((Cout, 1), lambda b: (0, 0)),
            pl.BlockSpec((K3, V), lambda b: (0, 0)),
        ],
        out_specs=pl.BlockSpec((1, Cout, V), lambda b: (b, 0, 0)),
        scratch_shapes=[
            pltpu.VMEM((Cin, Vp), jnp.float32),              # lane-padded x
            pltpu.VMEM((K3C, V), jnp.float32),               # im2col matrix
        ],
        compiler_params=pltpu.CompilerParams(
            dimension_semantics=("parallel",)),
    )(x, w2, b2, masks)
    # Output is already (B, Cout, V) == x.shape (Cout == Cin): no post-transpose.
    return out


if __name__ == "__main__":
    key = jax.random.PRNGKey(0)
    k1, k2, k3 = jax.random.split(key, 3)

    B, C, S, K = 2, 4, 8, 3          # in_c == out_c so .view(x_s) round-trips
    V = S ** 3
    x = jax.random.normal(k1, (B, C, V), dtype=jnp.float32)
    weight = 0.1 * jax.random.normal(k2, (C, C, K, K, K), dtype=jnp.float32)
    bias = 0.1 * jax.random.normal(k3, (C,), dtype=jnp.float32)

    out = jax.block_until_ready(voxel_conv(x, weight, bias))

    # reference: plain-XLA Conv3d with the same NCDHW semantics
    xv = x.reshape(B, C, S, S, S)
    ref = lax.conv_general_dilated(
        xv, weight, window_strides=(1, 1, 1),
        padding=((1, 1), (1, 1), (1, 1)),
        dimension_numbers=("NCDHW", "OIDHW", "NCDHW"),
    ) + bias[None, :, None, None, None]
    ref = ref.reshape(B, C, V)

    assert out.shape == x.shape
    err = float(jnp.max(jnp.abs(out - ref)))
    assert jnp.allclose(out, ref, atol=1e-4, rtol=1e-4), err
    print("KERNEL_OK")
</pallas_src>

<mosaic_0001>
module attributes {stable_mosaic.version = 11 : i64} {
  func.func @kernel(%arg0: i32, %arg1: memref<1x4x512xf32, #tpu.memory_space<vmem>>, %arg2: memref<4x108xf32, #tpu.memory_space<vmem>>, %arg3: memref<4x1xf32, #tpu.memory_space<vmem>>, %arg4: memref<27x512xf32, #tpu.memory_space<vmem>>, %arg5: memref<1x4x512xf32, #tpu.memory_space<vmem>>, %arg6: memref<4x768xf32, #tpu.memory_space<vmem>>, %arg7: memref<108x512xf32, #tpu.memory_space<vmem>>) attributes {dimension_semantics = [#tpu.dimension_semantics<parallel>], iteration_bounds = array<i64: 2>, scalar_prefetch = 0 : i64, scratch_operands = 2 : i64, tpu.core_type = #tpu.core_type<tc>, window_params = [{transform_indices = @transform_0, window_bounds = array<i64: 1, 4, 512>}, {pipeline_mode = #tpu.pipeline_mode<synchronous>, transform_indices = @transform_1, window_bounds = array<i64: 4, 108>}, {pipeline_mode = #tpu.pipeline_mode<synchronous>, transform_indices = @transform_2, window_bounds = array<i64: 4, 1>}, {pipeline_mode = #tpu.pipeline_mode<synchronous>, transform_indices = @transform_3, window_bounds = array<i64: 27, 512>}, {transform_indices = @transform_4, window_bounds = array<i64: 1, 4, 512>}]} {
    %cst = arith.constant 0.000000e+00 : f32
    %0 = vector.broadcast %cst : f32 to vector<4x128xf32>
    %c0 = arith.constant 0 : index
    %c0_0 = arith.constant 0 : index
    %1 = vector.load %arg6[%c0, %c0_0] : memref<4x768xf32, #tpu.memory_space<vmem>>, vector<4x128xf32>
    tpu.vector_store %arg6[%c0, %c0_0], %0 {strides = array<i32>} : memref<4x768xf32, #tpu.memory_space<vmem>>, vector<4x128xf32>,
    %c0_1 = arith.constant 0 : index
    %c640 = arith.constant 640 : index
    %2 = vector.load %arg6[%c0_1, %c640] : memref<4x768xf32, #tpu.memory_space<vmem>>, vector<4x128xf32>
    tpu.vector_store %arg6[%c0_1, %c640], %0 {strides = array<i32>} : memref<4x768xf32, #tpu.memory_space<vmem>>, vector<4x128xf32>,
    %c0_2 = arith.constant 0 : index
    %c0_3 = arith.constant 0 : index
    %c0_4 = arith.constant 0 : index
    %3 = vector.load %arg1[%c0_2, %c0_3, %c0_4] : memref<1x4x512xf32, #tpu.memory_space<vmem>>, vector<1x4x512xf32>
    %4 = vector.shape_cast %3 : vector<1x4x512xf32> to vector<4x512xf32>
    %c0_5 = arith.constant 0 : index
    %c128 = arith.constant 128 : index
    %5 = vector.load %arg6[%c0_5, %c128] : memref<4x768xf32, #tpu.memory_space<vmem>>, vector<4x512xf32>
    tpu.vector_store %arg6[%c0_5, %c128], %4 {strides = array<i32>} : memref<4x768xf32, #tpu.memory_space<vmem>>, vector<4x512xf32>,
    %c0_6 = arith.constant 0 : index
    %c55 = arith.constant 55 : index
    %6 = vector.load %arg6[%c0_6, %c55] : memref<4x768xf32, #tpu.memory_space<vmem>>, vector<4x512xf32>
    %c0_7 = arith.constant 0 : index
    %c0_8 = arith.constant 0 : index
    %7 = vector.load %arg4[%c0_7, %c0_8] : memref<27x512xf32, #tpu.memory_space<vmem>>, vector<1x512xf32>
    %8 = vector.broadcast %7 : vector<1x512xf32> to vector<4x512xf32>
    %9 = arith.mulf %6, %8 : vector<4x512xf32>
    %c0_9 = arith.constant 0 : index
    %c0_10 = arith.constant 0 : index
    %10 = vector.load %arg7[%c0_9, %c0_10] : memref<108x512xf32, #tpu.memory_space<vmem>>, vector<4x512xf32>
    tpu.vector_store %arg7[%c0_9, %c0_10], %9 {strides = array<i32>} : memref<108x512xf32, #tpu.memory_space<vmem>>, vector<4x512xf32>,
    %c0_11 = arith.constant 0 : index
    %c56 = arith.constant 56 : index
    %11 = vector.load %arg6[%c0_11, %c56] : memref<4x768xf32, #tpu.memory_space<vmem>>, vector<4x512xf32>
    %c1 = arith.constant 1 : index
    %c0_12 = arith.constant 0 : index
    %12 = vector.load %arg4[%c1, %c0_12] : memref<27x512xf32, #tpu.memory_space<vmem>>, vector<1x512xf32>
    %13 = vector.broadcast %12 : vector<1x512xf32> to vector<4x512xf32>
    %14 = arith.mulf %11, %13 : vector<4x512xf32>
    %c4 = arith.constant 4 : index
    %c0_13 = arith.constant 0 : index
    %15 = vector.load %arg7[%c4, %c0_13] : memref<108x512xf32, #tpu.memory_space<vmem>>, vector<4x512xf32>
    tpu.vector_store %arg7[%c4, %c0_13], %14 {strides = array<i32>} : memref<108x512xf32, #tpu.memory_space<vmem>>, vector<4x512xf32>,
    %c0_14 = arith.constant 0 : index
    %c57 = arith.constant 57 : index
    %16 = vector.load %arg6[%c0_14, %c57] : memref<4x768xf32, #tpu.memory_space<vmem>>, vector<4x512xf32>
    %c2 = arith.constant 2 : index
    %c0_15 = arith.constant 0 : index
    %17 = vector.load %arg4[%c2, %c0_15] : memref<27x512xf32, #tpu.memory_space<vmem>>, vector<1x512xf32>
    %18 = vector.broadcast %17 : vector<1x512xf32> to vector<4x512xf32>
    %19 = arith.mulf %16, %18 : vector<4x512xf32>
    %c8 = arith.constant 8 : index
    %c0_16 = arith.constant 0 : index
    %20 = vector.load %arg7[%c8, %c0_16] : memref<108x512xf32, #tpu.memory_space<vmem>>, vector<4x512xf32>
    tpu.vector_store %arg7[%c8, %c0_16], %19 {strides = array<i32>} : memref<108x512xf32, #tpu.memory_space<vmem>>, vector<4x512xf32>,
    %c0_17 = arith.constant 0 : index
    %c63 = arith.constant 63 : index
    %21 = vector.load %arg6[%c0_17, %c63] : memref<4x768xf32, #tpu.memory_space<vmem>>, vector<4x512xf32>
    %c3 = arith.constant 3 : index
    %c0_18 = arith.constant 0 : index
    %22 = vector.load %arg4[%c3, %c0_18] : memref<27x512xf32, #tpu.memory_space<vmem>>, vector<1x512xf32>
    %23 = vector.broadcast %22 : vector<1x512xf32> to vector<4x512xf32>
    %24 = arith.mulf %21, %23 : vector<4x512xf32>
    %c12 = arith.constant 12 : index
    %c0_19 = arith.constant 0 : index
    %25 = vector.load %arg7[%c12, %c0_19] : memref<108x512xf32, #tpu.memory_space<vmem>>, vector<4x512xf32>
    tpu.vector_store %arg7[%c12, %c0_19], %24 {strides = array<i32>} : memref<108x512xf32, #tpu.memory_space<vmem>>, vector<4x512xf32>,
    %c0_20 = arith.constant 0 : index
    %c64 = arith.constant 64 : index
    %26 = vector.load %arg6[%c0_20, %c64] : memref<4x768xf32, #tpu.memory_space<vmem>>, vector<4x512xf32>
    %c4_21 = arith.constant 4 : index
    %c0_22 = arith.constant 0 : index
    %27 = vector.load %arg4[%c4_21, %c0_22] : memref<27x512xf32, #tpu.memory_space<vmem>>, vector<1x512xf32>
    %28 = vector.broadcast %27 : vector<1x512xf32> to vector<4x512xf32>
    %29 = arith.mulf %26, %28 : vector<4x512xf32>
    %c16 = arith.constant 16 : index
    %c0_23 = arith.constant 0 : index
    %30 = vector.load %arg7[%c16, %c0_23] : memref<108x512xf32, #tpu.memory_space<vmem>>, vector<4x512xf32>
    tpu.vector_store %arg7[%c16, %c0_23], %29 {strides = array<i32>} : memref<108x512xf32, #tpu.memory_space<vmem>>, vector<4x512xf32>,
    %c0_24 = arith.constant 0 : index
    %c65 = arith.constant 65 : index
    %31 = vector.load %arg6[%c0_24, %c65] : memref<4x768xf32, #tpu.memory_space<vmem>>, vector<4x512xf32>
    %c5 = arith.constant 5 : index
    %c0_25 = arith.constant 0 : index
    %32 = vector.load %arg4[%c5, %c0_25] : memref<27x512xf32, #tpu.memory_space<vmem>>, vector<1x512xf32>
    %33 = vector.broadcast %32 : vector<1x512xf32> to vector<4x512xf32>
    %34 = arith.mulf %31, %33 : vector<4x512xf32>
    %c20 = arith.constant 20 : index
    %c0_26 = arith.constant 0 : index
    %35 = vector.load %arg7[%c20, %c0_26] : memref<108x512xf32, #tpu.memory_space<vmem>>, vector<4x512xf32>
    tpu.vector_store %arg7[%c20, %c0_26], %34 {strides = array<i32>} : memref<108x512xf32, #tpu.memory_space<vmem>>, vector<4x512xf32>,
    %c0_27 = arith.constant 0 : index
    %c71 = arith.constant 71 : index
    %36 = vector.load %arg6[%c0_27, %c71] : memref<4x768xf32, #tpu.memory_space<vmem>>, vector<4x512xf32>
    %c6 = arith.constant 6 : index
    %c0_28 = arith.constant 0 : index
    %37 = vector.load %arg4[%c6, %c0_28] : memref<27x512xf32, #tpu.memory_space<vmem>>, vector<1x512xf32>
    %38 = vector.broadcast %37 : vector<1x512xf32> to vector<4x512xf32>
    %39 = arith.mulf %36, %38 : vector<4x512xf32>
    %c24 = arith.constant 24 : index
    %c0_29 = arith.constant 0 : index
    %40 = vector.load %arg7[%c24, %c0_29] : memref<108x512xf32, #tpu.memory_space<vmem>>, vector<4x512xf32>
    tpu.vector_store %arg7[%c24, %c0_29], %39 {strides = array<i32>} : memref<108x512xf32, #tpu.memory_space<vmem>>, vector<4x512xf32>,
    %c0_30 = arith.constant 0 : index
    %c72 = arith.constant 72 : index
    %41 = vector.load %arg6[%c0_30, %c72] : memref<4x768xf32, #tpu.memory_space<vmem>>, vector<4x512xf32>
    %c7 = arith.constant 7 : index
    %c0_31 = arith.constant 0 : index
    %42 = vector.load %arg4[%c7, %c0_31] : memref<27x512xf32, #tpu.memory_space<vmem>>, vector<1x512xf32>
    %43 = vector.broadcast %42 : vector<1x512xf32> to vector<4x512xf32>
    %44 = arith.mulf %41, %43 : vector<4x512xf32>
    %c28 = arith.constant 28 : index
    %c0_32 = arith.constant 0 : index
    %45 = vector.load %arg7[%c28, %c0_32] : memref<108x512xf32, #tpu.memory_space<vmem>>, vector<4x512xf32>
    tpu.vector_store %arg7[%c28, %c0_32], %44 {strides = array<i32>} : memref<108x512xf32, #tpu.memory_space<vmem>>, vector<4x512xf32>,
    %c0_33 = arith.constant 0 : index
    %c73 = arith.constant 73 : index
    %46 = vector.load %arg6[%c0_33, %c73] : memref<4x768xf32, #tpu.memory_space<vmem>>, vector<4x512xf32>
    %c8_34 = arith.constant 8 : index
    %c0_35 = arith.constant 0 : index
    %47 = vector.load %arg4[%c8_34, %c0_35] : memref<27x512xf32, #tpu.memory_space<vmem>>, vector<1x512xf32>
    %48 = vector.broadcast %47 : vector<1x512xf32> to vector<4x512xf32>
    %49 = arith.mulf %46, %48 : vector<4x512xf32>
    %c32 = arith.constant 32 : index
    %c0_36 = arith.constant 0 : index
    %50 = vector.load %arg7[%c32, %c0_36] : memref<108x512xf32, #tpu.memory_space<vmem>>, vector<4x512xf32>
    tpu.vector_store %arg7[%c32, %c0_36], %49 {strides = array<i32>} : memref<108x512xf32, #tpu.memory_space<vmem>>, vector<4x512xf32>,
    %c0_37 = arith.constant 0 : index
    %c119 = arith.constant 119 : index
    %51 = vector.load %arg6[%c0_37, %c119] : memref<4x768xf32, #tpu.memory_space<vmem>>, vector<4x512xf32>
    %c9 = arith.constant 9 : index
    %c0_38 = arith.constant 0 : index
    %52 = vector.load %arg4[%c9, %c0_38] : memref<27x512xf32, #tpu.memory_space<vmem>>, vector<1x512xf32>
    %53 = vector.broadcast %52 : vector<1x512xf32> to vector<4x512xf32>
    %54 = arith.mulf %51, %53 : vector<4x512xf32>
    %c36 = arith.constant 36 : index
    %c0_39 = arith.constant 0 : index
    %55 = vector.load %arg7[%c36, %c0_39] : memref<108x512xf32, #tpu.memory_space<vmem>>, vector<4x512xf32>
    tpu.vector_store %arg7[%c36, %c0_39], %54 {strides = array<i32>} : memref<108x512xf32, #tpu.memory_space<vmem>>, vector<4x512xf32>,
    %c0_40 = arith.constant 0 : index
    %c120 = arith.constant 120 : index
    %56 = vector.load %arg6[%c0_40, %c120] : memref<4x768xf32, #tpu.memory_space<vmem>>, vector<4x512xf32>
    %c10 = arith.constant 10 : index
    %c0_41 = arith.constant 0 : index
    %57 = vector.load %arg4[%c10, %c0_41] : memref<27x512xf32, #tpu.memory_space<vmem>>, vector<1x512xf32>
    %58 = vector.broadcast %57 : vector<1x512xf32> to vector<4x512xf32>
    %59 = arith.mulf %56, %58 : vector<4x512xf32>
    %c40 = arith.constant 40 : index
    %c0_42 = arith.constant 0 : index
    %60 = vector.load %arg7[%c40, %c0_42] : memref<108x512xf32, #tpu.memory_space<vmem>>, vector<4x512xf32>
    tpu.vector_store %arg7[%c40, %c0_42], %59 {strides = array<i32>} : memref<108x512xf32, #tpu.memory_space<vmem>>, vector<4x512xf32>,
    %c0_43 = arith.constant 0 : index
    %c121 = arith.constant 121 : index
    %61 = vector.load %arg6[%c0_43, %c121] : memref<4x768xf32, #tpu.memory_space<vmem>>, vector<4x512xf32>
    %c11 = arith.constant 11 : index
    %c0_44 = arith.constant 0 : index
    %62 = vector.load %arg4[%c11, %c0_44] : memref<27x512xf32, #tpu.memory_space<vmem>>, vector<1x512xf32>
    %63 = vector.broadcast %62 : vector<1x512xf32> to vector<4x512xf32>
    %64 = arith.mulf %61, %63 : vector<4x512xf32>
    %c44 = arith.constant 44 : index
    %c0_45 = arith.constant 0 : index
    %65 = vector.load %arg7[%c44, %c0_45] : memref<108x512xf32, #tpu.memory_space<vmem>>, vector<4x512xf32>
    tpu.vector_store %arg7[%c44, %c0_45], %64 {strides = array<i32>} : memref<108x512xf32, #tpu.memory_space<vmem>>, vector<4x512xf32>,
    %c0_46 = arith.constant 0 : index
    %c127 = arith.constant 127 : index
    %66 = vector.load %arg6[%c0_46, %c127] : memref<4x768xf32, #tpu.memory_space<vmem>>, vector<4x512xf32>
    %c12_47 = arith.constant 12 : index
    %c0_48 = arith.constant 0 : index
    %67 = vector.load %arg4[%c12_47, %c0_48] : memref<27x512xf32, #tpu.memory_space<vmem>>, vector<1x512xf32>
    %68 = vector.broadcast %67 : vector<1x512xf32> to vector<4x512xf32>
    %69 = arith.mulf %66, %68 : vector<4x512xf32>
    %c48 = arith.constant 48 : index
    %c0_49 = arith.constant 0 : index
    %70 = vector.load %arg7[%c48, %c0_49] : memref<108x512xf32, #tpu.memory_space<vmem>>, vector<4x512xf32>
    tpu.vector_store %arg7[%c48, %c0_49], %69 {strides = array<i32>} : memref<108x512xf32, #tpu.memory_space<vmem>>, vector<4x512xf32>,
    %c0_50 = arith.constant 0 : index
    %c128_51 = arith.constant 128 : index
    %71 = vector.load %arg6[%c0_50, %c128_51] : memref<4x768xf32, #tpu.memory_space<vmem>>, vector<4x512xf32>
    %c52 = arith.constant 52 : index
    %c0_52 = arith.constant 0 : index
    %72 = vector.load %arg7[%c52, %c0_52] : memref<108x512xf32, #tpu.memory_space<vmem>>, vector<4x512xf32>
    tpu.vector_store %arg7[%c52, %c0_52], %71 {strides = array<i32>} : memref<108x512xf32, #tpu.memory_space<vmem>>, vector<4x512xf32>,
    %c0_53 = arith.constant 0 : index
    %c129 = arith.constant 129 : index
    %73 = vector.load %arg6[%c0_53, %c129] : memref<4x768xf32, #tpu.memory_space<vmem>>, vector<4x512xf32>
    %c14 = arith.constant 14 : index
    %c0_54 = arith.constant 0 : index
    %74 = vector.load %arg4[%c14, %c0_54] : memref<27x512xf32, #tpu.memory_space<vmem>>, vector<1x512xf32>
    %75 = vector.broadcast %74 : vector<1x512xf32> to vector<4x512xf32>
    %76 = arith.mulf %73, %75 : vector<4x512xf32>
    %c56_55 = arith.constant 56 : index
    %c0_56 = arith.constant 0 : index
    %77 = vector.load %arg7[%c56_55, %c0_56] : memref<108x512xf32, #tpu.memory_space<vmem>>, vector<4x512xf32>
    tpu.vector_store %arg7[%c56_55, %c0_56], %76 {strides = array<i32>} : memref<108x512xf32, #tpu.memory_space<vmem>>, vector<4x512xf32>,
    %c0_57 = arith.constant 0 : index
    %c135 = arith.constant 135 : index
    %78 = vector.load %arg6[%c0_57, %c135] : memref<4x768xf32, #tpu.memory_space<vmem>>, vector<4x512xf32>
    %c15 = arith.constant 15 : index
    %c0_58 = arith.constant 0 : index
    %79 = vector.load %arg4[%c15, %c0_58] : memref<27x512xf32, #tpu.memory_space<vmem>>, vector<1x512xf32>
    %80 = vector.broadcast %79 : vector<1x512xf32> to vector<4x512xf32>
    %81 = arith.mulf %78, %80 : vector<4x512xf32>
    %c60 = arith.constant 60 : index
    %c0_59 = arith.constant 0 : index
    %82 = vector.load %arg7[%c60, %c0_59] : memref<108x512xf32, #tpu.memory_space<vmem>>, vector<4x512xf32>
    tpu.vector_store %arg7[%c60, %c0_59], %81 {strides = array<i32>} : memref<108x512xf32, #tpu.memory_space<vmem>>, vector<4x512xf32>,
    %c0_60 = arith.constant 0 : index
    %c136 = arith.constant 136 : index
    %83 = vector.load %arg6[%c0_60, %c136] : memref<4x768xf32, #tpu.memory_space<vmem>>, vector<4x512xf32>
    %c16_61 = arith.constant 16 : index
    %c0_62 = arith.constant 0 : index
    %84 = vector.load %arg4[%c16_61, %c0_62] : memref<27x512xf32, #tpu.memory_space<vmem>>, vector<1x512xf32>
    %85 = vector.broadcast %84 : vector<1x512xf32> to vector<4x512xf32>
    %86 = arith.mulf %83, %85 : vector<4x512xf32>
    %c64_63 = arith.constant 64 : index
    %c0_64 = arith.constant 0 : index
    %87 = vector.load %arg7[%c64_63, %c0_64] : memref<108x512xf32, #tpu.memory_space<vmem>>, vector<4x512xf32>
    tpu.vector_store %arg7[%c64_63, %c0_64], %86 {strides = array<i32>} : memref<108x512xf32, #tpu.memory_space<vmem>>, vector<4x512xf32>,
    %c0_65 = arith.constant 0 : index
    %c137 = arith.constant 137 : index
    %88 = vector.load %arg6[%c0_65, %c137] : memref<4x768xf32, #tpu.memory_space<vmem>>, vector<4x512xf32>
    %c17 = arith.constant 17 : index
    %c0_66 = arith.constant 0 : index
    %89 = vector.load %arg4[%c17, %c0_66] : memref<27x512xf32, #tpu.memory_space<vmem>>, vector<1x512xf32>
    %90 = vector.broadcast %89 : vector<1x512xf32> to vector<4x512xf32>
    %91 = arith.mulf %88, %90 : vector<4x512xf32>
    %c68 = arith.constant 68 : index
    %c0_67 = arith.constant 0 : index
    %92 = vector.load %arg7[%c68, %c0_67] : memref<108x512xf32, #tpu.memory_space<vmem>>, vector<4x512xf32>
    tpu.vector_store %arg7[%c68, %c0_67], %91 {strides = array<i32>} : memref<108x512xf32, #tpu.memory_space<vmem>>, vector<4x512xf32>,
    %c0_68 = arith.constant 0 : index
    %c183 = arith.constant 183 : index
    %93 = vector.load %arg6[%c0_68, %c183] : memref<4x768xf32, #tpu.memory_space<vmem>>, vector<4x512xf32>
    %c18 = arith.constant 18 : index
    %c0_69 = arith.constant 0 : index
    %94 = vector.load %arg4[%c18, %c0_69] : memref<27x512xf32, #tpu.memory_space<vmem>>, vector<1x512xf32>
    %95 = vector.broadcast %94 : vector<1x512xf32> to vector<4x512xf32>
    %96 = arith.mulf %93, %95 : vector<4x512xf32>
    %c72_70 = arith.constant 72 : index
    %c0_71 = arith.constant 0 : index
    %97 = vector.load %arg7[%c72_70, %c0_71] : memref<108x512xf32, #tpu.memory_space<vmem>>, vector<4x512xf32>
    tpu.vector_store %arg7[%c72_70, %c0_71], %96 {strides = array<i32>} : memref<108x512xf32, #tpu.memory_space<vmem>>, vector<4x512xf32>,
    %c0_72 = arith.constant 0 : index
    %c184 = arith.constant 184 : index
    %98 = vector.load %arg6[%c0_72, %c184] : memref<4x768xf32, #tpu.memory_space<vmem>>, vector<4x512xf32>
    %c19 = arith.constant 19 : index
    %c0_73 = arith.constant 0 : index
    %99 = vector.load %arg4[%c19, %c0_73] : memref<27x512xf32, #tpu.memory_space<vmem>>, vector<1x512xf32>
    %100 = vector.broadcast %99 : vector<1x512xf32> to vector<4x512xf32>
    %101 = arith.mulf %98, %100 : vector<4x512xf32>
    %c76 = arith.constant 76 : index
    %c0_74 = arith.constant 0 : index
    %102 = vector.load %arg7[%c76, %c0_74] : memref<108x512xf32, #tpu.memory_space<vmem>>, vector<4x512xf32>
    tpu.vector_store %arg7[%c76, %c0_74], %101 {strides = array<i32>} : memref<108x512xf32, #tpu.memory_space<vmem>>, vector<4x512xf32>,
    %c0_75 = arith.constant 0 : index
    %c185 = arith.constant 185 : index
    %103 = vector.load %arg6[%c0_75, %c185] : memref<4x768xf32, #tpu.memory_space<vmem>>, vector<4x512xf32>
    %c20_76 = arith.constant 20 : index
    %c0_77 = arith.constant 0 : index
    %104 = vector.load %arg4[%c20_76, %c0_77] : memref<27x512xf32, #tpu.memory_space<vmem>>, vector<1x512xf32>
    %105 = vector.broadcast %104 : vector<1x512xf32> to vector<4x512xf32>
    %106 = arith.mulf %103, %105 : vector<4x512xf32>
    %c80 = arith.constant 80 : index
    %c0_78 = arith.constant 0 : index
    %107 = vector.load %arg7[%c80, %c0_78] : memref<108x512xf32, #tpu.memory_space<vmem>>, vector<4x512xf32>
    tpu.vector_store %arg7[%c80, %c0_78], %106 {strides = array<i32>} : memref<108x512xf32, #tpu.memory_space<vmem>>, vector<4x512xf32>,
    %c0_79 = arith.constant 0 : index
    %c191 = arith.constant 191 : index
    %108 = vector.load %arg6[%c0_79, %c191] : memref<4x768xf32, #tpu.memory_space<vmem>>, vector<4x512xf32>
    %c21 = arith.constant 21 : index
    %c0_80 = arith.constant 0 : index
    %109 = vector.load %arg4[%c21, %c0_80] : memref<27x512xf32, #tpu.memory_space<vmem>>, vector<1x512xf32>
    %110 = vector.broadcast %109 : vector<1x512xf32> to vector<4x512xf32>
    %111 = arith.mulf %108, %110 : vector<4x512xf32>
    %c84 = arith.constant 84 : index
    %c0_81 = arith.constant 0 : index
    %112 = vector.load %arg7[%c84, %c0_81] : memref<108x512xf32, #tpu.memory_space<vmem>>, vector<4x512xf32>
    tpu.vector_store %arg7[%c84, %c0_81], %111 {strides = array<i32>} : memref<108x512xf32, #tpu.memory_space<vmem>>, vector<4x512xf32>,
    %c0_82 = arith.constant 0 : index
    %c192 = arith.constant 192 : index
    %113 = vector.load %arg6[%c0_82, %c192] : memref<4x768xf32, #tpu.memory_space<vmem>>, vector<4x512xf32>
    %c22 = arith.constant 22 : index
    %c0_83 = arith.constant 0 : index
    %114 = vector.load %arg4[%c22, %c0_83] : memref<27x512xf32, #tpu.memory_space<vmem>>, vector<1x512xf32>
    %115 = vector.broadcast %114 : vector<1x512xf32> to vector<4x512xf32>
    %116 = arith.mulf %113, %115 : vector<4x512xf32>
    %c88 = arith.constant 88 : index
    %c0_84 = arith.constant 0 : index
    %117 = vector.load %arg7[%c88, %c0_84] : memref<108x512xf32, #tpu.memory_space<vmem>>, vector<4x512xf32>
    tpu.vector_store %arg7[%c88, %c0_84], %116 {strides = array<i32>} : memref<108x512xf32, #tpu.memory_space<vmem>>, vector<4x512xf32>,
    %c0_85 = arith.constant 0 : index
    %c193 = arith.constant 193 : index
    %118 = vector.load %arg6[%c0_85, %c193] : memref<4x768xf32, #tpu.memory_space<vmem>>, vector<4x512xf32>
    %c23 = arith.constant 23 : index
    %c0_86 = arith.constant 0 : index
    %119 = vector.load %arg4[%c23, %c0_86] : memref<27x512xf32, #tpu.memory_space<vmem>>, vector<1x512xf32>
    %120 = vector.broadcast %119 : vector<1x512xf32> to vector<4x512xf32>
    %121 = arith.mulf %118, %120 : vector<4x512xf32>
    %c92 = arith.constant 92 : index
    %c0_87 = arith.constant 0 : index
    %122 = vector.load %arg7[%c92, %c0_87] : memref<108x512xf32, #tpu.memory_space<vmem>>, vector<4x512xf32>
    tpu.vector_store %arg7[%c92, %c0_87], %121 {strides = array<i32>} : memref<108x512xf32, #tpu.memory_space<vmem>>, vector<4x512xf32>,
    %c0_88 = arith.constant 0 : index
    %c199 = arith.constant 199 : index
    %123 = vector.load %arg6[%c0_88, %c199] : memref<4x768xf32, #tpu.memory_space<vmem>>, vector<4x512xf32>
    %c24_89 = arith.constant 24 : index
    %c0_90 = arith.constant 0 : index
    %124 = vector.load %arg4[%c24_89, %c0_90] : memref<27x512xf32, #tpu.memory_space<vmem>>, vector<1x512xf32>
    %125 = vector.broadcast %124 : vector<1x512xf32> to vector<4x512xf32>
    %126 = arith.mulf %123, %125 : vector<4x512xf32>
    %c96 = arith.constant 96 : index
    %c0_91 = arith.constant 0 : index
    %127 = vector.load %arg7[%c96, %c0_91] : memref<108x512xf32, #tpu.memory_space<vmem>>, vector<4x512xf32>
    tpu.vector_store %arg7[%c96, %c0_91], %126 {strides = array<i32>} : memref<108x512xf32, #tpu.memory_space<vmem>>, vector<4x512xf32>,
    %c0_92 = arith.constant 0 : index
    %c200 = arith.constant 200 : index
    %128 = vector.load %arg6[%c0_92, %c200] : memref<4x768xf32, #tpu.memory_space<vmem>>, vector<4x512xf32>
    %c25 = arith.constant 25 : index
    %c0_93 = arith.constant 0 : index
    %129 = vector.load %arg4[%c25, %c0_93] : memref<27x512xf32, #tpu.memory_space<vmem>>, vector<1x512xf32>
    %130 = vector.broadcast %129 : vector<1x512xf32> to vector<4x512xf32>
    %131 = arith.mulf %128, %130 : vector<4x512xf32>
    %c100 = arith.constant 100 : index
    %c0_94 = arith.constant 0 : index
    %132 = vector.load %arg7[%c100, %c0_94] : memref<108x512xf32, #tpu.memory_space<vmem>>, vector<4x512xf32>
    tpu.vector_store %arg7[%c100, %c0_94], %131 {strides = array<i32>} : memref<108x512xf32, #tpu.memory_space<vmem>>, vector<4x512xf32>,
    %c0_95 = arith.constant 0 : index
    %c201 = arith.constant 201 : index
    %133 = vector.load %arg6[%c0_95, %c201] : memref<4x768xf32, #tpu.memory_space<vmem>>, vector<4x512xf32>
    %c26 = arith.constant 26 : index
    %c0_96 = arith.constant 0 : index
    %134 = vector.load %arg4[%c26, %c0_96] : memref<27x512xf32, #tpu.memory_space<vmem>>, vector<1x512xf32>
    %135 = vector.broadcast %134 : vector<1x512xf32> to vector<4x512xf32>
    %136 = arith.mulf %133, %135 : vector<4x512xf32>
    %c104 = arith.constant 104 : index
    %c0_97 = arith.constant 0 : index
    %137 = vector.load %arg7[%c104, %c0_97] : memref<108x512xf32, #tpu.memory_space<vmem>>, vector<4x512xf32>
    tpu.vector_store %arg7[%c104, %c0_97], %136 {strides = array<i32>} : memref<108x512xf32, #tpu.memory_space<vmem>>, vector<4x512xf32>,
    %c0_98 = arith.constant 0 : index
    %c0_99 = arith.constant 0 : index
    %138 = vector.load %arg2[%c0_98, %c0_99] : memref<4x108xf32, #tpu.memory_space<vmem>>, vector<4x108xf32>
    %c0_100 = arith.constant 0 : index
    %c0_101 = arith.constant 0 : index
    %139 = vector.load %arg7[%c0_100, %c0_101] : memref<108x512xf32, #tpu.memory_space<vmem>>, vector<108x512xf32>
    %cst_102 = arith.constant dense<0.000000e+00> : vector<4x512xf32>
    %140 = tpu.matmul %138, %139, %cst_102 {dimension_numbers = #tpu.dot_dimension_numbers<[1], [0], [0], [1], [0, 0, 1, 1], [], []>} : vector<4x108xf32>, vector<108x512xf32>, vector<4x512xf32> -> vector<4x512xf32>
    %c0_103 = arith.constant 0 : index
    %c0_104 = arith.constant 0 : index
    %141 = vector.load %arg3[%c0_103, %c0_104] : memref<4x1xf32, #tpu.memory_space<vmem>>, vector<4x1xf32>
    %142 = vector.broadcast %141 : vector<4x1xf32> to vector<4x512xf32>
    %143 = arith.addf %140, %142 : vector<4x512xf32>
    %c0_105 = arith.constant 0 : index
    %c0_106 = arith.constant 0 : index
    %c0_107 = arith.constant 0 : index
    %144 = vector.load %arg5[%c0_105, %c0_106, %c0_107] : memref<1x4x512xf32, #tpu.memory_space<vmem>>, vector<1x4x512xf32>
    %145 = vector.shape_cast %144 : vector<1x4x512xf32> to vector<4x512xf32>
    %146 = vector.shape_cast %143 : vector<4x512xf32> to vector<1x4x512xf32>
    tpu.vector_store %arg5[%c0_105, %c0_106, %c0_107], %146 {strides = array<i32>} : memref<1x4x512xf32, #tpu.memory_space<vmem>>, vector<1x4x512xf32>,
    return
  }
  func.func @transform_0(%arg0: i32) -> (i32, i32, i32) {
    %c0_i32 = arith.constant 0 : i32
    %c0_i32_0 = arith.constant 0 : i32
    %c0_i32_1 = arith.constant 0 : i32
    return %arg0, %c0_i32, %c0_i32_0 : i32, i32, i32
  }
  func.func @transform_1(%arg0: i32) -> (i32, i32) {
    %c0_i32 = arith.constant 0 : i32
    %c0_i32_0 = arith.constant 0 : i32
    %c0_i32_1 = arith.constant 0 : i32
    return %c0_i32, %c0_i32_0 : i32, i32
  }
  func.func @transform_2(%arg0: i32) -> (i32, i32) {
    %c0_i32 = arith.constant 0 : i32
    %c0_i32_0 = arith.constant 0 : i32
    %c0_i32_1 = arith.constant 0 : i32
    return %c0_i32, %c0_i32_0 : i32, i32
  }
  func.func @transform_3(%arg0: i32) -> (i32, i32) {
    %c0_i32 = arith.constant 0 : i32
    %c0_i32_0 = arith.constant 0 : i32
    %c0_i32_1 = arith.constant 0 : i32
    return %c0_i32, %c0_i32_0 : i32, i32
  }
  func.func @transform_4(%arg0: i32) -> (i32, i32, i32) {
    %c0_i32 = arith.constant 0 : i32
    %c0_i32_0 = arith.constant 0 : i32
    %c0_i32_1 = arith.constant 0 : i32
    return %arg0, %c0_i32, %c0_i32_0 : i32, i32, i32
  }
}

</mosaic_0001>

<bundles_post_ra>
// kernel: tpu_custom_call.1
= control target key start
LH: loop header
LB: loop body
LE: loop exit
PB: predicated region body
PF: predicated region fallthrough
CT: control target
= control target key end

     0   :  { %9 = vsyncpa [#allocation5], 0  ;;  %s3851_s0 = inlined_call_operand.hbm [shape: f32[2,4,512], index: 0, kind: input, shape index: {}]   ;;  %s3852_s1 = inlined_call_operand.vmem [shape: f32[4,108], index: 1, kind: input, shape index: {}]   ;;  %s3853_s2 = inlined_call_operand.vmem [shape: f32[4,1], index: 2, kind: input, shape index: {}]   ;;  %s3854_s3 = inlined_call_operand.hbm [shape: f32[27,512], index: 3, kind: input, shape index: {}]   ;;  %s3855_s4 = inlined_call_operand.hbm [shape: f32[2,4,512], index: 4, kind: output, shape index: {}]  }
   0x1   :  { %11 = vsyncpa [#allocation5 + $0x1], 0 }
   0x2   :  { %12 = vsyncpa [#allocation8], 0 }
   0x3   :  { %13 = vsyncpa [#allocation6], 0 }
   0x4   :  { %15 = vsyncpa [#allocation6 + $0x1], 0  ;;  %s2666_s15 = smov 0   ;;  %s2668_s16 = smov 0  }
   0x5   :  { %s2670_s17 = smov 0   ;;  %s2672_s18 = smov 0  }
   0x6 LB: > { %s2687_s19 = sadd.s32 4294967295, %s2614_s18   ;;  %s2318_s20 = sadd.s32 4294967294, %s2614_s18   ;;  %s2614_s18 = sphi %s2672_s18, %s3891_s18   ;;  %s2610_s17 = sphi %s2670_s17, %s3890_s17   ;;  %s2606_s16 = sphi %s2668_s16, %s3889_s16   ;;  %s2602_s15 = sphi %s2666_s15, %s3888_s15  }
   0x7   : > { %p41_p0 = scmp.ne.s32.totalorder %s2606_s16, %s2602_s15  ;;  %p3856_p1 = scmp.eq.s32.totalorder %s2687_s19, 0 }
   0x8   : > { %p134_p3 = scmp.eq.s32.totalorder %s2318_s20, 1  ;;  %p2319_p5 = scmp.ge.s32.totalorder %s2614_s18, 1 }
   0x9   : > { %p2696_p4 = por %p3856_p1, %p41_p0  ;;  %p141_p7 = scmp.lt.s32.totalorder %s2614_s18, 3 }
   0xa   : > { %p2701_p6 = por %p134_p3, %p41_p0  ;;  %s2616_s24 = smov [#allocation7]  }
   0xb   : > { %s3864_s21 = scalar_select %p2696_p4, 1, 0 }
   0xc   : > { %s3865_s22 = scalar_select %p2701_p6, 1, 0 }
   0xd   : > { %p2706_p8 = pnand %p2319_p5, %p141_p7  ;;  %s159_s25 = sshll.u32 %s2616_s24, 4  ;;  %s2710_s25 = int_to_ptr.vmem [resolvable:$true] %s159_s25 }
   0xe   : > { %s2722_s27 = sadd.s32 1, %s2614_s18   ;;  %s28_s28 = sadd.s32 1, %s2610_s17 }
   0xf   : > { %s3866_s23 = scalar_select %p2706_p8, 1, 0 }
  0x10   : > { %p2410_p9 = pneg %p2706_p8  ;;  %s25_s29 = ssub.s32 %s2614_s18, %s2722_s27 }
  0x11   : > { %s2486_s6 = scalar_lea.hbm %s3854_s3, 2048 }
  0x12   : > { %p2717_p11 = pnand %p2410_p9, %p3856_p1  ;;  %p2487_p12 = scmp.ne.s32.totalorder %s3854_s3, %s2486_s6 }
  0x13   : > { %p2493_p5 = scmp.lt.u32.totalorder %s2486_s6, %s3854_s3 }
  0x14   : > { %p2488_p13 = pneg %p2717_p11 }
  0x16   : > { %p2489_p0 = pnand %p2488_p13, %p2487_p12 }
  0x18   : > { %p2490_p3 = pneg %p2489_p0 }
  0x1a   : > { %p2495_p7 = pnand %p2493_p5, %p2490_p3 }
  0x1c   : > { %2498 = shalt.err (!%p2495_p7)
}
  0x1d   : > { %s2499_s11 = scalar_lea.vmem %s2710_s25, 2048  ;;  %p2507_p2 = scmp.lt.s32.totalorder %s2710_s25, %s2710_s25 }
  0x1e   : > { %p2500_p9 = scmp.ne.s32.totalorder %s2710_s25, %s2499_s11  ;;  %p2508_p6 = scmp.lt.s32.totalorder %s2499_s11, %s2499_s11 }
  0x20   : > { %p2502_p10 = pnand %p2500_p9, %p2488_p13  ;;  %p2509_p4 = por %p2508_p6, %p2507_p2 }
  0x22   : > { %p2503_p1 = pneg %p2502_p10 }
  0x24   : > { %p2510_p8 = pnand %p2509_p4, %p2503_p1 }
  0x26   : > { %2513 = shalt.err (!%p2510_p8)
}
  0x27   : > { %s2617_s12 = smov 512   ;;  %s2618_s13 = smov 32  }
  0x28   : > { %2413 = dma.hbm_to_vmem [thread:$0]  (!%p2717_p11), %s3854_s3, 2048, %s2710_s25, [#allocation8], %s2617_s12, %s2617_s12, %s2618_s13  }
  0x29   : > { %p26_p2 = scmp.eq.s32.totalorder %s25_s29, 0  ;;  %p35_p1 = scmp.ne.s32.totalorder %s2610_s17, %s2606_s16 }
  0x2a   : > { %p36_p4 = scmp.eq.s32.totalorder %s2614_s18, 0  ;;  %p2423_p6 = scmp.lt.s32.totalorder %s2614_s18, 2 }
  0x2b   : > { %s2753_s24 = scalar_select %p26_p2, %s2610_s17, %s28_s28  }
  0x2c   : > { %p37_p8 = por %p36_p4, %p35_p1  ;;  %p3868_p10 = scmp.eq.s32.totalorder %s2687_s19, 1 }
  0x2d   : > { %s173_s5 = sand.u32 1, %s2610_s17   ;;  %s2340_s6 = sshll.u32 %s2614_s18, 8 }
  0x2e   : > { %p2757_p12 = por %p3868_p10, %p35_p1  ;;  %s2322_s7 = sshll.u32 %s173_s5, 4 }
  0x2f   : > { %s2766_s9 = scalar_lea.hbm %s3851_s0, %s2340_s6  ;;  %s177_s25 = scalar_lea.vmem [#allocation4], %s2322_s7 }
  0x30   : > { %s185_s28 = sshll.u32 %s177_s25, 4  ;;  %p2768_p11 = pnand %p2423_p6, %p37_p8  ;;  %s2772_s28 = int_to_ptr.vmem [resolvable:$true] %s185_s28 }
  0x31   : > { %s174_s10 = scalar_lea.sflag [#allocation5], %s173_s5  ;;  %s2514_s11 = scalar_lea.hbm %s2766_s9, 256 }
  0x32   : > { %p2515_p13 = scmp.ne.s32.totalorder %s2766_s9, %s2514_s11  ;;  %p2516_p0 = pneg %p2768_p11 }
  0x33   : > { %s2519_s14 = scalar_lea.hbm %s3851_s0, 512  ;;  %p2520_p7 = scmp.lt.u32.totalorder %s2766_s9, %s3851_s0 }
  0x34   : > { %p2517_p3 = pnand %p2516_p0, %p2515_p13  ;;  %p2521_p9 = scmp.lt.u32.totalorder %s2519_s14, %s2514_s11 }
  0x35   : > { %p2523_p1 = scmp.lt.u32.totalorder %s2514_s11, %s2766_s9 }
  0x36   : > { %p2518_p5 = pneg %p2517_p3  ;;  %p2522_p2 = por %p2521_p9, %p2520_p7 }
  0x38   : > { %p2524_p4 = por %p2523_p1, %p2522_p2 }
  0x3a   : > { %p2525_p6 = pnand %p2524_p4, %p2518_p5 }
  0x3c   : > { %2528 = shalt.err (!%p2525_p6)
}
  0x3d   : > { %s2529_s5 = scalar_lea.vmem %s2772_s28, 256  ;;  %s2619_s7 = smov [#allocation4]  }
  0x3e   : > { %p2530_p8 = scmp.ne.s32.totalorder %s2772_s28, %s2529_s5  ;;  %s2534_s26 = sshll.u32 %s2619_s7, 4  ;;  %s2535_s26 = int_to_ptr.vmem [resolvable:$false] %s2534_s26 }
  0x3f   : > { %s2536_s8 = scalar_lea.vmem %s2535_s26, 512  ;;  %p2537_p3 = scmp.lt.s32.totalorder %s2772_s28, %s2535_s26 }
  0x40   : > { %p2532_p10 = pnand %p2530_p8, %p2516_p0  ;;  %p2538_p7 = scmp.lt.s32.totalorder %s2536_s8, %s2529_s5 }
  0x42   : > { %p2533_p13 = pneg %p2532_p10  ;;  %p2539_p9 = por %p2538_p7, %p2537_p3 }
  0x44   : > { %p2540_p2 = pnand %p2539_p9, %p2533_p13 }
  0x46   : > { %2543 = shalt.err (!%p2540_p2)
}
  0x47   : > { %2417 = dma.hbm_to_vmem [thread:$0]  (!%p2768_p11), %s2766_s9, 256, %s2772_s28, %s174_s10  }
  0x48   : > { %p3871_p5 = scmp.ne.s32.totalorder %s3866_s23, 0 }
  0x49   : > { %s2802_s25 = sand.u32 (!%p3871_p5), 1, %s2606_s16   ;;  %p3872_p0 = scmp.ne.s32.totalorder (!%p3871_p5), %s3864_s21, 0 }
  0x4a   : > { %194 = sbr.rel (%p3871_p5) target bundleno = 839 (0x347), region = 36  ;;  %s3859_s11 = sshll.u32 (!%p3871_p5), %s2802_s25, 4 }
  0x4b   : > { %s197_s12 = scalar_lea.sflag (!%p3871_p5), [#allocation5], %s2802_s25  ;;  %s2808_s13 = scalar_lea.vmem (!%p3871_p5), [#allocation4], %s3859_s11 }
  0x51   : > { %2589 = dma.done.wait (%p3872_p0), %s197_s12, 256  }
  0x52   : > { %2591 = vsyncadd (%p3872_p0), %s197_s12, 4294967040  ;;  %p3873_p11 = scmp.eq.s32.totalorder %s2687_s19, 0 }
  0x54   : > { %2593 = dma.done.wait (%p3873_p11), [#allocation8], 2048   ;;  %p3874_p1 = pmov %p3873_p11 }
  0x55   : > { %v240_v0 = vlaneseq  ;;  %v2620_v1 = vmov 0.0   ;;  %v307_v7 = vld [vmem:[#allocation7 + $0x1] ss:$8 sm:$0xf]  ;;  %s2621_s21 = smov 56   ;;  %s2622_s23 = smov 55  }
  0x56   : > { %2595 = vsyncadd (%p3874_p1), [#allocation8], 4294965248  ;;  %229 = vst [vmem:[#allocation2] sm:$0xf] %v2620_v1  ;;  %2206 = vmatprep.mubr.f32.mxu1 %v2620_v1  ;;  %2135 = vmatprep.mubr.f32.mxu0 %v2620_v1  ;;  %v231_v29 = vld [vmem:[%s2808_s13] sm:$0xff]  ;;  %v232_v32 = vld [vmem:[%s2808_s13 + $0x8] sm:$0xff] }
  0x57   : > { %230 = vst [vmem:[#allocation2 + $0x14] sm:$0xf] %v2620_v1  ;;  %v241_v2 = vshrl.u32 %v240_v0, 7  ;;  %v238_v8 = vld [vmem:[#allocation7] ss:$8 sm:$0xf] }
  0x58   : > { %v376_v13 = vld [vmem:[#allocation7 + $0x2] ss:$8 sm:$0xf]  ;;  %v444_v23 = vld [vmem:[#allocation7 + $0x3] ss:$8 sm:$0xf] }
  0x59   : > { %v2818_v3 = vsub.s32 0, %v241_v2  ;;  %v2820_v4 = vsub.s32 1, %v241_v2  ;;  %v2822_v5 = vsub.s32 2, %v241_v2  ;;  %v2824_v6 = vsub.s32 3, %v241_v2  ;;  %233 = vst [vmem:[#allocation2 + $0x4] sm:$0xff] %v231_v29  ;;  %234 = vst [vmem:[#allocation2 + $0xc] sm:$0xff] %v232_v32 }
  0x5a   : > { %v513_v31 = vld [vmem:[#allocation7 + $0x4] ss:$8 sm:$0xf]  ;;  %v580_v36 = vld [vmem:[#allocation7 + $0x5] ss:$8 sm:$0xf] }
  0x5b   : > { %v312_v9 = vrot.slane %v307_v7, %v2818_v3  ;;  %v316_v10 = vrot.slane %v307_v7, %v2820_v4  ;;  %v243_v11 = vrot.slane %v238_v8, %v2818_v3  ;;  %v247_v12 = vrot.slane %v238_v8, %v2820_v4  ;;  %s2623_s9 = smov 57   ;;  %v647_v47 = vld [vmem:[#allocation7 + $0x6] ss:$8 sm:$0xf]  ;;  %s2624_s28 = smov 63  }
  0x5c   : > { %v320_v14 = vrot.slane %v307_v7, %v2822_v5  ;;  %v324_v15 = vrot.slane %v307_v7, %v2824_v6  ;;  %v251_v16 = vrot.slane %v238_v8, %v2822_v5  ;;  %v255_v17 = vrot.slane %v238_v8, %v2824_v6  ;;  %v713_v48 = vld [vmem:[#allocation7 + $0x7] ss:$8 sm:$0xf]  ;;  %v780_v53 = vld [vmem:[#allocation7 + $0x20] ss:$8 sm:$0xf] }
  0x5d   : > { %v325_v18 = vcombine.low %v312_v9, %v316_v10  ;;  %v256_v19 = vcombine.low %v243_v11, %v247_v12  ;;  %v389_v21 = vrot.slane %v376_v13, %v2822_v5  ;;  %v393_v22 = vrot.slane %v376_v13, %v2824_v6  ;;  %v846_v57 = vld [vmem:[#allocation7 + $0x21] ss:$8 sm:$0xf]  ;;  %v915_v62 = vld [vmem:[#allocation7 + $0x22] ss:$8 sm:$0xf] }
  0x5e   : > { %v326_v20 = vcombine.low %v320_v14, %v324_v15  ;;  %v257_v24 = vcombine.low %v251_v16, %v255_v17  ;;  %v381_v25 = vrot.slane %v376_v13, %v2818_v3  ;;  %v385_v26 = vrot.slane %v376_v13, %v2820_v4  ;;  %s2625_s29 = smov 64   ;;  %s2626_s10 = smov 65  }
  0x5f   : > { %327 = vrot.lane.b32.xlu1 %v325_v18, %s2621_s21  ;;  %258 = vrot.lane.b32.xlu0 %v256_v19, %s2622_s23  ;;  %v457_v27 = vrot.slane %v444_v23, %v2822_v5  ;;  %v461_v28 = vrot.slane %v444_v23, %v2824_v6  ;;  %v395_v30 = vcombine.low %v389_v21, %v393_v22  ;;  %v2882_v18 = vld [vmem:[#allocation7 + $0x23] ss:$8 sm:$0xf]  ;;  %v2884_v19 = vld [vmem:[#allocation7 + $0x41] ss:$8 sm:$0xf] }
  0x60   : > { %v394_v33 = vcombine.low %v381_v25, %v385_v26  ;;  %v449_v34 = vrot.slane %v444_v23, %v2818_v3  ;;  %v453_v35 = vrot.slane %v444_v23, %v2820_v4  ;;  %v526_v38 = vrot.slane %v513_v31, %v2822_v5  ;;  %s2627_s14 = smov 71   ;;  %s2628_s20 = smov 72  }
  0x61   : > { %v463_v37 = vcombine.low %v457_v27, %v461_v28  ;;  %v530_v39 = vrot.slane %v513_v31, %v2824_v6  ;;  %v518_v40 = vrot.slane %v513_v31, %v2818_v3  ;;  %v522_v41 = vrot.slane %v513_v31, %v2820_v4  ;;  %v1464_v28 = vld [vmem:[#allocation7 + $0x43] ss:$8 sm:$0xf]  ;;  %s2629_s6 = smov 73   ;;  %s3860_s5 = smov 119  }
  0x62   : > { %v593_v42 = vrot.slane %v580_v36, %v2822_v5  ;;  %v597_v43 = vrot.slane %v580_v36, %v2824_v6  ;;  %v462_v44 = vcombine.low %v449_v34, %v453_v35  ;;  %v585_v45 = vrot.slane %v580_v36, %v2818_v3  ;;  %s2631_s7 = smov 120   ;;  %s2632_s26 = smov 121  }
  0x63   : > { %329 = vrot.lane.b32.xlu1 %v326_v20, %s2621_s21  ;;  %260 = vrot.lane.b32.xlu0 %v257_v24, %s2622_s23  ;;  %v589_v46 = vrot.slane %v580_v36, %v2820_v4  ;;  %v532_v49 = vcombine.low %v526_v38, %v530_v39  ;;  %v531_v50 = vcombine.low %v518_v40, %v522_v41  ;;  %v1398_v24 = vld [vmem:[#allocation7 + $0x42] ss:$8 sm:$0xf]  ;;  %s2633_s8 = smov 127   ;;  %s2634_s12 = smov 1   ;;  %vm333_vm0 = vcmask 457728  }
  0x64   : > { %v599_v51 = vcombine.low %v593_v42, %v597_v43  ;;  %v660_v52 = vrot.slane %v647_v47, %v2822_v5  ;;  %v664_v55 = vrot.slane %v647_v47, %v2824_v6  ;;  %v652_v56 = vrot.slane %v647_v47, %v2818_v3  ;;  %s2635_s13 = smov 7   ;;  %s2636_s11 = smov 8  }
  0x65   : > { %v598_v54 = vcombine.low %v585_v45, %v589_v46  ;;  %v656_v58 = vrot.slane %v647_v47, %v2820_v4  ;;  %v726_v59 = vrot.slane %v713_v48, %v2822_v5  ;;  %v730_v60 = vrot.slane %v713_v48, %v2824_v6  ;;  %v1597_v45 = vld [vmem:[#allocation7 + $0x45] ss:$8 sm:$0xf] }
  0x66   : > { %v718_v61 = vrot.slane %v713_v48, %v2818_v3  ;;  %v722_v63 = vrot.slane %v713_v48, %v2820_v4  ;;  %v793_v0 = vrot.slane %v780_v53, %v2822_v5  ;;  %v797_v1 = vrot.slane %v780_v53, %v2824_v6 }
  0x67   : > { %398 = vrot.lane.b32.xlu1 %v395_v30, %s2623_s9  ;;  %396 = vrot.lane.b32.xlu0 %v394_v33, %s2623_s9  ;;  %v785_v2 = vrot.slane %v780_v53, %v2818_v3  ;;  %v789_v7 = vrot.slane %v780_v53, %v2820_v4  ;;  %v859_v8 = vrot.slane %v846_v57, %v2822_v5  ;;  %vm266_vm1 = vcmask 1043456  }
  0x68   : > { %v863_v9 = vrot.slane %v846_v57, %v2824_v6  ;;  %v851_v10 = vrot.slane %v846_v57, %v2818_v3  ;;  %v855_v11 = vrot.slane %v846_v57, %v2820_v4  ;;  %v928_v12 = vrot.slane %v915_v62, %v2822_v5 }
  0x69   : > { %v932_v13 = vrot.slane %v915_v62, %v2824_v6  ;;  %v666_v14 = vcombine.low %v660_v52, %v664_v55  ;;  %v665_v15 = vcombine.low %v652_v56, %v656_v58  ;;  %v920_v16 = vrot.slane %v915_v62, %v2818_v3 }
  0x6a   : > { %v924_v17 = vrot.slane %v915_v62, %v2820_v4  ;;  %v732_v20 = vcombine.low %v726_v59, %v730_v60  ;;  %v731_v21 = vcombine.low %v718_v61, %v722_v63  ;;  %v2886_v22 = vcombine.low %v793_v0, %v797_v1  ;;  %v1730_v59 = vld [vmem:[#allocation7 + $0x47] ss:$8 sm:$0xf]  ;;  %v1797_v63 = vld [vmem:[#allocation7 + $0x60] ss:$8 sm:$0xf] }
  0x6b   : > { %466 = vrot.lane.b32.xlu1 %v463_v37, %s2624_s28  ;;  %464 = vrot.lane.b32.xlu0 %v462_v44, %s2624_s28  ;;  %v2888_v23 = vcombine.low %v785_v2, %v789_v7  ;;  %v2892_v25 = vcombine.low %v859_v8, %v863_v9  ;;  %v2894_v26 = vcombine.low %v851_v10, %v855_v11  ;;  %v1531_v37 = vld [vmem:[#allocation7 + $0x44] ss:$8 sm:$0xf]  ;;  %vm264_vm2 = vcmask 449536  }
  0x6c   : > { %v2896_v27 = vcombine.low %v928_v12, %v932_v13  ;;  %v996_v29 = vrot.slane %v2882_v18, %v2822_v5  ;;  %v1000_v30 = vrot.slane %v2882_v18, %v2824_v6  ;;  %v988_v31 = vrot.slane %v2882_v18, %v2818_v3  ;;  %v1863_v12 = vld [vmem:[#allocation7 + $0x61] ss:$8 sm:$0xf] }
  0x6d   : > { %v1336_v32 = vrot.slane %v2884_v19, %v2818_v3  ;;  %v2906_v33 = vcombine.low %v920_v16, %v924_v17  ;;  %v1340_v34 = vrot.slane %v2884_v19, %v2820_v4  ;;  %v1411_v35 = vrot.slane %v1398_v24, %v2822_v5 }
  0x6e   : > { %v1415_v36 = vrot.slane %v1398_v24, %v2824_v6  ;;  %v992_v38 = vrot.slane %v2882_v18, %v2820_v4  ;;  %v1403_v39 = vrot.slane %v1398_v24, %v2818_v3  ;;  %v1407_v40 = vrot.slane %v1398_v24, %v2820_v4  ;;  %v1930_v24 = vld [vmem:[#allocation7 + $0x62] ss:$8 sm:$0xf] }
  0x6f   : > { %535 = vrot.lane.b32.xlu1 %v532_v49, %s2625_s29  ;;  %533 = vrot.lane.b32.xlu0 %v531_v50, %s2625_s29  ;;  %v1477_v41 = vrot.slane %v1464_v28, %v2822_v5  ;;  %v2919_v42 = vcombine.low %v1336_v32, %v1340_v34  ;;  %v1481_v44 = vrot.slane %v1464_v28, %v2824_v6  ;;  %vm470_vm3 = vcmask 515072  }
  0x70   : > { %v2921_v43 = vcombine.low %v1411_v35, %v1415_v36  ;;  %v2924_v46 = vcombine.low %v1403_v39, %v1407_v40  ;;  %v1469_v47 = vrot.slane %v1464_v28, %v2818_v3  ;;  %v1473_v48 = vrot.slane %v1464_v28, %v2820_v4 }
  0x71   : > { %v1544_v49 = vrot.slane %v1531_v37, %v2822_v5  ;;  %v2929_v50 = vcombine.low %v1477_v41, %v1481_v44  ;;  %v1536_v52 = vrot.slane %v1531_v37, %v2818_v3  ;;  %v1540_v53 = vrot.slane %v1531_v37, %v2820_v4 }
  0x72   : > { %v2934_v55 = vcombine.low %v1469_v47, %v1473_v48  ;;  %v1610_v56 = vrot.slane %v1597_v45, %v2822_v5  ;;  %v1614_v57 = vrot.slane %v1597_v45, %v2824_v6  ;;  %v1602_v58 = vrot.slane %v1597_v45, %v2818_v3 }
  0x73   : > { %602 = vrot.lane.b32.xlu1 %v599_v51, %s2626_s10  ;;  %600 = vrot.lane.b32.xlu0 %v598_v54, %s2626_s10  ;;  %v1548_v51 = vrot.slane %v1531_v37, %v2824_v6  ;;  %v1664_v54 = vld [vmem:[#allocation7 + $0x46] ss:$8 sm:$0xf]  ;;  %v2943_v61 = vcombine.low %v1536_v52, %v1540_v53  ;;  %v1606_v62 = vrot.slane %v1597_v45, %v2820_v4  ;;  %v1052_v45 = vld [vmem:[#allocation7 + $0x24] ss:$8 sm:$0xf] }
  0x74   : > { %v2946_v0 = vcombine.low %v1610_v56, %v1614_v57  ;;  %v1677_v1 = vrot.slane %v1664_v54, %v2822_v5  ;;  %v1681_v2 = vrot.slane %v1664_v54, %v2824_v6  ;;  %v1669_v7 = vrot.slane %v1664_v54, %v2818_v3  ;;  %v1132_v56 = vld [vmem:[#allocation7 + $0x26] ss:$8 sm:$0xf] }
  0x75   : > { %v2941_v60 = vcombine.low %v1544_v49, %v1548_v51  ;;  %v2951_v8 = vcombine.low %v1602_v58, %v1606_v62  ;;  %v1673_v9 = vrot.slane %v1664_v54, %v2820_v4  ;;  %v1743_v10 = vrot.slane %v1730_v59, %v2822_v5 }
  0x76   : > { %v1747_v11 = vrot.slane %v1730_v59, %v2824_v6  ;;  %v2956_v13 = vcombine.low %v1677_v1, %v1681_v2  ;;  %v1810_v16 = vrot.slane %v1797_v63, %v2822_v5  ;;  %v1802_v32 = vrot.slane %v1797_v63, %v2818_v3 }
  0x77   : > { %669 = vrot.lane.b32.xlu1 %v666_v14, %s2627_s14  ;;  %667 = vrot.lane.b32.xlu0 %v665_v15, %s2627_s14  ;;  %v1735_v14 = vrot.slane %v1730_v59, %v2818_v3  ;;  %v1739_v15 = vrot.slane %v1730_v59, %v2820_v4  ;;  %v2965_v17 = vcombine.low %v1669_v7, %v1673_v9  ;;  %v1265_v9 = vld [vmem:[#allocation7 + $0x40] ss:$8 sm:$0xf]  ;;  %vm402_vm4 = vcmask 465920  }
  0x78   : > { %v1806_v34 = vrot.slane %v1797_v63, %v2820_v4  ;;  %v1876_v35 = vrot.slane %v1863_v12, %v2822_v5  ;;  %v1872_v37 = vrot.slane %v1863_v12, %v2820_v4  ;;  %v1943_v40 = vrot.slane %v1930_v24, %v2822_v5 }
  0x79   : > { %v2970_v28 = vcombine.low %v1735_v14, %v1739_v15  ;;  %v1947_v41 = vrot.slane %v1930_v24, %v2824_v6  ;;  %v1935_v44 = vrot.slane %v1930_v24, %v2818_v3  ;;  %v1939_v49 = vrot.slane %v1930_v24, %v2820_v4 }
  0x7a   : > { %v2980_v39 = vcombine.low %v1802_v32, %v1806_v34  ;;  %v1069_v53 = vrot.slane %v1052_v45, %v2824_v6  ;;  %v1001_v54 = vcombine.low %v988_v31, %v992_v38  ;;  %v1145_v58 = vrot.slane %v1132_v56, %v2822_v5  ;;  %v1198_v31 = vld [vmem:[#allocation7 + $0x27] ss:$8 sm:$0xf] }
  0x7b   : > { %735 = vrot.lane.b32.xlu1 %v732_v20, %s2628_s20  ;;  %733 = vrot.lane.b32.xlu0 %v731_v21, %s2628_s20  ;;  %v2967_v20 = vcombine.low %v1743_v10, %v1747_v11  ;;  %v1814_v21 = vrot.slane %v1797_v63, %v2824_v6  ;;  %v2994_v51 = vcombine.low %v1943_v40, %v1947_v41  ;;  %v3097_v40 = vld [vmem:[#allocation2 + $0x8] sm:$0xff]  ;;  %v305_v41 = vld [vmem:[#allocation2 + $0x10] sm:$0xf]  ;;  %vm539_vm5 = vcmask 523264  }
  0x7c   : > { %v2996_v52 = vcombine.low %v1935_v44, %v1939_v49  ;;  %v1137_v59 = vrot.slane %v1132_v56, %v2818_v3  ;;  %v1141_v18 = vrot.slane %v1132_v56, %v2820_v4  ;;  %v1211_v62 = vrot.slane %v1198_v31, %v2822_v5 }
  0x7d   : > { %v2975_v36 = vcombine.low %v1810_v16, %v1814_v21  ;;  %v1215_v63 = vrot.slane %v1198_v31, %v2824_v6  ;;  %v1203_v2 = vrot.slane %v1198_v31, %v2818_v3  ;;  %v1207_v7 = vrot.slane %v1198_v31, %v2820_v4 }
  0x7e   : > { %v1150_v1 = vcombine.low %v1137_v59, %v1141_v18  ;;  %v1278_v10 = vrot.slane %v1265_v9, %v2822_v5  ;;  %v1282_v11 = vrot.slane %v1265_v9, %v2824_v6  ;;  %v1274_v16 = vrot.slane %v1265_v9, %v2820_v4 }
  0x7f   : > { %802 = vrot.lane.b32.xlu1 %v2886_v22, %s2629_s6  ;;  %800 = vrot.lane.b32.xlu0 %v2888_v23, %s2629_s6  ;;  %v1880_v22 = vrot.slane %v1863_v12, %v2824_v6  ;;  %v1868_v23 = vrot.slane %v1863_v12, %v2818_v3  ;;  %v1270_v12 = vrot.slane %v1265_v9, %v2818_v3  ;;  %vm496_vm6 = vcmask 531456  }
  0x80   : > { %v1217_v14 = vcombine.low %v1211_v62, %v1215_v63  ;;  %v1216_v15 = vcombine.low %v1203_v2, %v1207_v7  ;;  %v1284_v21 = vcombine.low %v1278_v10, %v1282_v11  ;;  %v1344_v32 = vrot.slane %v2884_v19, %v2822_v5 }
  0x81   : > { %v2989_v47 = vcombine.low %v1876_v35, %v1880_v22  ;;  %v2991_v48 = vcombine.low %v1868_v23, %v1872_v37  ;;  %v1283_v24 = vcombine.low %v1270_v12, %v1274_v16  ;;  %vm427_vm7 = vcmask 580608  }
  0x82   : > { %vm359_vm8 = vcmask 588800   ;;  %vm290_vm9 = vcmask 596992   ;;  %vm3862_vm10 = vcmask 973824   ;;  %vm3863_vm11 = vcmask 982016  }
  0x83   : > { %868 = vrot.lane.b32.xlu1 %v2892_v25, %s3860_s5  ;;  %866 = vrot.lane.b32.xlu0 %v2894_v26, %s3860_s5  ;;  %v1002_v25 = vcombine.low %v996_v29, %v1000_v30  ;;  %v1065_v26 = vrot.slane %v1052_v45, %v2822_v5  ;;  %v1057_v29 = vrot.slane %v1052_v45, %v2818_v3  ;;  %s2637_s5 = smov 9   ;;  %vm1009_vm12 = vcmask 990208  }
  0x84   : > { %v1061_v30 = vrot.slane %v1052_v45, %v2820_v4  ;;  %v1348_v3 = vrot.slane %v2884_v19, %v2824_v6  ;;  %v3059_v4 = vld [vmem:[#allocation2 + $0xc] sm:$0xff]  ;;  %vm1078_vm13 = vcmask 1039360   ;;  %vm1103_vm14 = vcmask 7168  }
  0x85   : > { %v1071_v57 = vcombine.low %v1065_v26, %v1069_v53  ;;  %1127 = vst [vmem:[#allocation3 + $0xd8] sm:$0xf0] %v3059_v4  ;;  %vm1035_vm15 = vcmask 56320  }
  0x86   : > { %v1350_v34 = vcombine.low %v1344_v32, %v1348_v3 }
  0x87   : > { %937 = vrot.lane.b32.xlu1 %v2896_v27, %s2631_s7  ;;  %935 = vrot.lane.b32.xlu0 %v2906_v33, %s2631_s7  ;;  %v1149_v27 = vrot.slane %v1132_v56, %v2824_v6  ;;  %v1070_v33 = vcombine.low %v1057_v29, %v1061_v30 }
  0x89   : > { %v1151_v38 = vcombine.low %v1145_v58, %v1149_v27  ;;  %v442_v27 = vld [vmem:[#allocation2 + $0x10] sm:$0xf] }
  0x8b   : > { %1005 = vrot.lane.b32.xlu1 %v1002_v25, %s2632_s26  ;;  %1003 = vrot.lane.b32.xlu0 %v1001_v54, %s2632_s26 }
  0x8f   : > { %1074 = vrot.lane.b32.xlu1 %v1071_v57, %s2633_s8  ;;  %1072 = vrot.lane.b32.xlu0 %v1070_v33, %s2633_s8 }
  0x93   : > { %1154 = vrot.lane.b32.xlu1 %v1151_v38, %s2634_s12  ;;  %1152 = vrot.lane.b32.xlu0 %v1150_v1, %s2634_s12 }
  0x97   : > { %1220 = vrot.lane.b32.xlu1 %v1217_v14, %s2635_s13  ;;  %1218 = vrot.lane.b32.xlu0 %v1216_v15, %s2635_s13 }
  0x9b   : > { %1287 = vrot.lane.b32.xlu1 %v1284_v21, %s2636_s11  ;;  %1285 = vrot.lane.b32.xlu0 %v1283_v24, %s2636_s11 }
  0x9f   : > { %1353 = vrot.lane.b32.xlu1 %v1350_v34, %s2637_s5  ;;  %1351 = vrot.lane.b32.xlu0 %v2919_v42, %s2637_s5 }
  0xa3   : > { %1420 = vrot.lane.b32.xlu1 %v2921_v43, %s2622_s23  ;;  %1418 = vrot.lane.b32.xlu0 %v2924_v46, %s2622_s23  ;;  %v3087_v43 = vld [vmem:[#allocation2] sm:$0xff] }
  0xa7   : > { %1486 = vrot.lane.b32.xlu1 %v2929_v50, %s2621_s21  ;;  %1484 = vrot.lane.b32.xlu0 %v2934_v55, %s2621_s21  ;;  %v237_v55 = vld [vmem:[#allocation2 + $0x10] sm:$0xf] }
  0xab   : > { %1553 = vrot.lane.b32.xlu1 %v2941_v60, %s2623_s9  ;;  %1551 = vrot.lane.b32.xlu0 %v2943_v61, %s2623_s9 }
  0xaf   : > { %1619 = vrot.lane.b32.xlu1 %v2946_v0, %s2624_s28  ;;  %1617 = vrot.lane.b32.xlu0 %v2951_v8, %s2624_s28 }
  0xb3   : > { %1686 = vrot.lane.b32.xlu1 %v2956_v13, %s2625_s29  ;;  %1684 = vrot.lane.b32.xlu0 %v2965_v17, %s2625_s29 }
  0xb7   : > { %1752 = vrot.lane.b32.xlu1 %v2967_v20, %s2626_s10  ;;  %1750 = vrot.lane.b32.xlu0 %v2970_v28, %s2626_s10  ;;  %v374_v20 = vld [vmem:[#allocation2 + $0x10] sm:$0xf] }
  0xbb   : > { %1819 = vrot.lane.b32.xlu1 %v2975_v36, %s2627_s14  ;;  %1817 = vrot.lane.b32.xlu0 %v2980_v39, %s2627_s14 }
  0xbf   : > { %1885 = vrot.lane.b32.xlu1 %v2989_v47, %s2628_s20  ;;  %1883 = vrot.lane.b32.xlu0 %v2991_v48, %s2628_s20 }
  0xc3   : > { %1952 = vrot.lane.b32.xlu1 %v2994_v51, %s2629_s6  ;;  %1950 = vrot.lane.b32.xlu0 %v2996_v52, %s2629_s6 }
  0xd1   : > { %v328_v5 = vpop.permute.xlu1 %327  ;;  %v259_v6 = vpop.permute.xlu0 %258 }
  0xd2   : > { %v331_v19 = vrot.slane %v328_v5, 4  ;;  %v262_v0 = vrot.slane %v259_v6, 4 }
  0xd4   : > { %v334_v42 = vsel %vm333_vm0, %v331_v19, %v328_v5  ;;  %v265_v18 = vsel %vm264_vm2, %v262_v0, %v259_v6 }
  0xd5   : > { %v330_v46 = vpop.permute.xlu1 %329  ;;  %v261_v50 = vpop.permute.xlu0 %260  ;;  %v3090_v60 = vmul.f32 %v334_v42, %v3087_v43  ;;  %v272_v63 = vmul.f32 %v265_v18, %v3087_v43 }
  0xd6   : > { %v263_v61 = vrot.slane %v261_v50, 4  ;;  %v332_v36 = vrot.slane %v330_v46, 4 }
  0xd7   : > { %351 = vrot.lane.b32.xlu0 %v3090_v60, %s2628_s20  ;;  %v278_v12 = vcombine.high %v272_v63, %v272_v63 }
  0xd8   : > { %v274_v8 = vmul.f32 %v263_v61, %v237_v55  ;;  %v267_v28 = vsel %vm266_vm1, %v262_v0, %v263_v61  ;;  %v335_v47 = vsel %vm266_vm1, %v331_v19, %v332_v36  ;;  %v342_v52 = vmul.f32 %v332_v36, %v305_v41 }
  0xd9   : > { %v399_v13 = vpop.permute.xlu1 %398  ;;  %v397_v17 = vpop.permute.xlu0 %396  ;;  %v268_v23 = vsel %vm264_vm2, %v267_v28, %v261_v50  ;;  %v336_v54 = vsel %vm333_vm0, %v335_v47, %v330_v46  ;;  %v346_v46 = vcombine.low %v3090_v60, %v3090_v60 }
  0xda   : > { %v401_v35 = vrot.slane %v399_v13, 4  ;;  %288 = vrot.lane.b32.xlu1 %v274_v8, %s2629_s6  ;;  %v400_v44 = vrot.slane %v397_v17, 4  ;;  %v273_v51 = vmul.f32 %v268_v23, %v3097_v40  ;;  %v348_v56 = vcombine.low %v342_v52, %v342_v52 }
  0xdb   : > { %v341_v57 = vmul.f32 %v336_v54, %v3097_v40 }
  0xdc   : > { %v411_v22 = vmul.f32 %v401_v35, %v374_v20  ;;  %v404_v29 = vsel %vm266_vm1, %v400_v44, %v401_v35  ;;  %v403_v9 = vsel %vm402_vm4, %v400_v44, %v397_v17  ;;  %v279_v34 = vcombine.high %v273_v51, %v273_v51 }
  0xdd   : > { %v467_v37 = vpop.permute.xlu1 %466  ;;  %v465_v39 = vpop.permute.xlu0 %464  ;;  %v405_v58 = vsel %vm402_vm4, %v404_v29, %v399_v13  ;;  %v409_v11 = vmul.f32 %v403_v9, %v3087_v43  ;;  %v347_v16 = vcombine.low %v341_v57, %v341_v57 }
  0xde   : > { %v468_v45 = vrot.slane %v465_v39, 4  ;;  %425 = vrot.lane.b32.xlu1 %v411_v22, %s2627_s14  ;;  %v469_v48 = vrot.slane %v467_v37, 4  ;;  %v410_v38 = vmul.f32 %v405_v58, %v3097_v40 }
  0xdf   : > { %v415_v21 = vcombine.high %v409_v11, %v409_v11 }
  0xe0   : > { %v471_v49 = vsel %vm470_vm3, %v468_v45, %v465_v39  ;;  %v472_v30 = vsel %vm266_vm1, %v468_v45, %v469_v48  ;;  %v479_v62 = vmul.f32 %v469_v48, %v442_v27  ;;  %v416_v50 = vcombine.high %v410_v38, %v410_v38 }
  0xe1   : > { %v3104_v25 = vmul.f32 %v471_v49, %v3087_v43  ;;  %v3106_v26 = vpop.permute.xlu1 %535  ;;  %v534_v53 = vpop.permute.xlu0 %533  ;;  %v473_v31 = vsel %vm470_vm3, %v472_v30, %v467_v37  ;;  %v511_v37 = vld [vmem:[#allocation2 + $0x10] sm:$0xf] }
  0xe2   : > { %284 = vrot.lane.b32.xlu1 %v273_v51, %s2629_s6  ;;  %v478_v1 = vmul.f32 %v473_v31, %v3097_v40  ;;  %v485_v10 = vcombine.low %v479_v62, %v479_v62  ;;  %v538_v19 = vrot.slane %v3106_v26, 4  ;;  %v537_v42 = vrot.slane %v534_v53, 4  ;;  %v578_v49 = vld [vmem:[#allocation2 + $0x10] sm:$0xf] }
  0xe3   : > { %488 = vrot.lane.b32.xlu0 %v3104_v25, %s2626_s10  ;;  %v483_v17 = vcombine.low %v3104_v25, %v3104_v25 }
  0xe4   : > { %v484_v3 = vcombine.low %v478_v1, %v478_v1  ;;  %v541_v13 = vsel %vm266_vm1, %v537_v42, %v538_v19  ;;  %v540_v35 = vsel %vm539_vm5, %v537_v42, %v534_v53  ;;  %v548_v45 = vmul.f32 %v538_v19, %v511_v37 }
  0xe5   : > { %v3116_v33 = vpop.permute.xlu1 %602  ;;  %v3118_v59 = vpop.permute.xlu0 %600  ;;  %v542_v60 = vsel %vm539_vm5, %v541_v13, %v3106_v26  ;;  %v3179_v23 = vmul.f32 %v540_v35, %v3087_v43 }
  0xe6   : > { %357 = vrot.lane.b32.xlu1 %v348_v56, %s2628_s20  ;;  %v605_v0 = vrot.slane %v3116_v33, 4  ;;  %v604_v8 = vrot.slane %v3118_v59, 4  ;;  %v547_v22 = vmul.f32 %v542_v60, %v3097_v40 }
  0xe7   : > { %355 = vrot.lane.b32.xlu0 %v341_v57, %s2628_s20  ;;  %v552_v48 = vcombine.high %v3179_v23, %v3179_v23 }
  0xe8   : > { %v607_v36 = vsel %vm266_vm1, %v604_v8, %v605_v0  ;;  %v614_v54 = vmul.f32 %v605_v0, %v578_v49  ;;  %v553_v29 = vcombine.high %v547_v22, %v547_v22  ;;  %v606_v57 = vsel %vm496_vm6, %v604_v8, %v3118_v59 }
  0xe9   : > { %v3127_v2 = vpop.permute.xlu1 %669  ;;  %v3129_v7 = vpop.permute.xlu0 %667  ;;  %v608_v39 = vsel %vm496_vm6, %v607_v36, %v3116_v33  ;;  %v612_v31 = vmul.f32 %v606_v57, %v3087_v43 }
  0xea   : > { %421 = vrot.lane.b32.xlu1 %v410_v38, %s2627_s14  ;;  %v613_v47 = vmul.f32 %v608_v39, %v3097_v40  ;;  %v672_v25 = vrot.slane %v3127_v2, 4  ;;  %v671_v26 = vrot.slane %v3129_v7, 4  ;;  %v620_v18 = vcombine.low %v614_v54, %v614_v54 }
  0xeb   : > { %492 = vrot.lane.b32.xlu0 %v478_v1, %s2626_s10 }
  0xec   : > { %v619_v53 = vcombine.low %v613_v47, %v613_v47  ;;  %v674_v33 = vsel %vm266_vm1, %v671_v26, %v672_v25  ;;  %v673_v59 = vsel %vm427_vm7, %v671_v26, %v3129_v7 }
  0xed   : > { %v3135_v14 = vpop.permute.xlu1 %735  ;;  %v3137_v15 = vpop.permute.xlu0 %733  ;;  %v675_v38 = vsel %vm427_vm7, %v674_v33, %v3127_v2 }
  0xee   : > { %494 = vrot.lane.b32.xlu1 %v485_v10, %s2626_s10  ;;  %v738_v58 = vrot.slane %v3135_v14, 4  ;;  %v737_v27 = vrot.slane %v3137_v15, 4  ;;  %v680_v9 = vmul.f32 %v675_v38, %v3097_v40  ;;  %v679_v10 = vmul.f32 %v673_v59, %v3087_v43 }
  0xef   : > { %282 = vrot.lane.b32.xlu0 %v278_v12, %s2629_s6 }
  0xf1   : > { %v3141_v24 = vpop.permute.xlu1 %802  ;;  %v3143_v32 = vpop.permute.xlu0 %800 }
  0xf2   : > { %353 = vrot.lane.b32.xlu1 %v347_v16, %s2628_s20  ;;  %v805_v60 = vrot.slane %v3141_v24, 4  ;;  %v804_v35 = vrot.slane %v3143_v32, 4 }
  0xf3   : > { %419 = vrot.lane.b32.xlu0 %v415_v21, %s2627_s14  ;;  %v685_v21 = vcombine.high %v679_v10, %v679_v10 }
  0xf4   : > { %v807_v39 = vsel %vm266_vm1, %v804_v35, %v805_v60  ;;  %v806_v49 = vsel %vm290_vm9, %v804_v35, %v3143_v32 }
  0xf5   : > { %v3147_v5 = vpop.permute.xlu1 %868  ;;  %v3149_v6 = vpop.permute.xlu0 %866 }
  0xf6   : > { %490 = vrot.lane.b32.xlu1 %v484_v3, %s2626_s10  ;;  %v711_v3 = vld [vmem:[#allocation2 + $0x10] sm:$0xf]  ;;  %v870_v37 = vrot.slane %v3149_v6, 4 }
  0xf7   : > { %286 = vrot.lane.b32.xlu0 %v279_v34, %s2629_s6  ;;  %v747_v42 = vmul.f32 %v738_v58, %v711_v3 }
  0xf9   : > { %v3156_v55 = vpop.permute.xlu1 %937  ;;  %v3158_v61 = vpop.permute.xlu0 %935  ;;  %v753_v8 = vcombine.low %v747_v42, %v747_v42 }
  0xfa   : > { %349 = vrot.lane.b32.xlu1 %v346_v46, %s2628_s20  ;;  %v686_v46 = vcombine.high %v680_v9, %v680_v9 }
  0xfb   : > { %423 = vrot.lane.b32.xlu0 %v416_v50, %s2627_s14  ;;  %v739_v50 = vsel %vm359_vm8, %v737_v27, %v3137_v15  ;;  %v618_v15 = vcombine.low %v612_v31, %v612_v31 }
  0xfd   : > { %v3169_v20 = vpop.permute.xlu1 %1005  ;;  %v3171_v28 = vpop.permute.xlu0 %1003 }
  0xfe   : > { %486 = vrot.lane.b32.xlu1 %v483_v17, %s2626_s10  ;;  %v745_v17 = vmul.f32 %v739_v50, %v3087_v43  ;;  %v913_v50 = vld [vmem:[#allocation2 + $0x10] sm:$0xf] }
  0xff   : > { %280 = vrot.lane.b32.xlu0 %v272_v63, %s2629_s6  ;;  %v740_v63 = vsel %vm266_vm1, %v737_v27, %v738_v58  ;;  %v844_v58 = vld [vmem:[#allocation2 + $0x10] sm:$0xf] }
 0x100   : > { %v741_v2 = vsel %vm359_vm8, %v740_v63, %v3135_v14 }
 0x101   : > { %v3183_v41 = vpop.permute.xlu1 %1074  ;;  %v3185_v44 = vpop.permute.xlu0 %1072  ;;  %v746_v16 = vmul.f32 %v741_v2, %v3097_v40  ;;  %v1007_v2 = vrot.slane %v3171_v28, 4 }
 0x102   : > { %558 = vrot.lane.b32.xlu1 %v547_v22, %s2625_s29  ;;  %v871_v22 = vrot.slane %v3147_v5, 4 }
 0x103   : > { %417 = vrot.lane.b32.xlu0 %v409_v11, %s2627_s14  ;;  %v645_v11 = vld [vmem:[#allocation2 + $0x10] sm:$0xf]  ;;  %v752_v14 = vcombine.low %v746_v16, %v746_v16 }
 0x104   : > { %v681_v7 = vmul.f32 %v672_v25, %v645_v11  ;;  %v874_v25 = vsel %vm266_vm1, %v870_v37, %v871_v22  ;;  %v881_v38 = vmul.f32 %v871_v22, %v844_v58  ;;  %v1008_v11 = vrot.slane %v3169_v20, 4  ;;  %v981_v22 = vld [vmem:[#allocation2 + $0x10] sm:$0xf] }
 0x105   : > { %v3192_v51 = vpop.permute.xlu1 %1154  ;;  %v3194_v52 = vpop.permute.xlu0 %1152  ;;  %v875_v32 = vsel %vm3862_vm10, %v874_v25, %v3147_v5 }
 0x106   : > { %562 = vrot.lane.b32.xlu1 %v548_v45, %s2625_s29  ;;  %v1011_v42 = vsel %vm266_vm1, %v1007_v2, %v1008_v11 }
 0x107   : > { %556 = vrot.lane.b32.xlu0 %v552_v48, %s2625_s29  ;;  %v808_v48 = vsel %vm290_vm9, %v807_v39, %v3141_v24  ;;  %v778_v24 = vld [vmem:[#allocation2 + $0x10] sm:$0xf] }
 0x108   : > { %v814_v57 = vmul.f32 %v805_v60, %v778_v24 }
 0x109   : > { %v3200_v30 = vpop.permute.xlu1 %1220  ;;  %v3202_v56 = vpop.permute.xlu0 %1218 }
 0x10a   : > { %625 = vrot.lane.b32.xlu1 %v619_v53, %s2624_s28  ;;  %v813_v53 = vmul.f32 %v808_v48, %v3097_v40 }
 0x10b   : > { %560 = vrot.lane.b32.xlu0 %v553_v29, %s2625_s29  ;;  %v3274_v29 = vmul.f32 %v806_v49, %v3087_v43  ;;  %v1010_v49 = vsel %vm1009_vm12, %v1007_v2, %v3171_v28 }
 0x10c   : > { %v819_v63 = vcombine.high %v813_v53, %v813_v53 }
 0x10d   : > { %v3214_v62 = vpop.permute.xlu1 %1287  ;;  %v3221_v1 = vpop.permute.xlu0 %1285  ;;  %v818_v27 = vcombine.high %v3274_v29, %v3274_v29 }
 0x10e   : > { %629 = vrot.lane.b32.xlu1 %v620_v18, %s2624_s28  ;;  %v940_v18 = vrot.slane %v3156_v55, 4 }
 0x10f   : > { %623 = vrot.lane.b32.xlu0 %v612_v31, %s2624_s28  ;;  %v939_v31 = vrot.slane %v3158_v61, 4 }
 0x111   : > { %v3227_v12 = vpop.permute.xlu1 %1353  ;;  %v3232_v34 = vpop.permute.xlu0 %1351 }
 0x112   : > { %691 = vrot.lane.b32.xlu1 %v680_v9, %s2623_s9  ;;  %v873_v9 = vsel %vm3862_vm10, %v870_v37, %v3149_v6  ;;  %vm966_vm10 = vcmask 64512  }
 0x113   : > { %627 = vrot.lane.b32.xlu0 %v613_v47, %s2624_s28  ;;  %v751_v47 = vcombine.low %v745_v17, %v745_v17  ;;  %v879_v3 = vmul.f32 %v873_v9, %v3087_v43 }
 0x115   : > { %v3235_v19 = vpop.permute.xlu1 %1420  ;;  %v3242_v0 = vpop.permute.xlu0 %1418  ;;  %v885_v28 = vcombine.low %v879_v3, %v879_v3 }
 0x116   : > { %695 = vrot.lane.b32.xlu1 %v681_v7, %s2623_s9 }
 0x117   : > { %689 = vrot.lane.b32.xlu0 %v685_v21, %s2623_s9 }
 0x119   : > { %v3244_v13 = vpop.permute.xlu1 %1486  ;;  %v3251_v36 = vpop.permute.xlu0 %1484 }
 0x11a   : > { %758 = vrot.lane.b32.xlu1 %v752_v14, %s2621_s21  ;;  %v942_v14 = vsel %vm3863_vm11, %v939_v31, %v3158_v61  ;;  %v950_v61 = vmul.f32 %v940_v18, %v913_v50 }
 0x11b   : > { %693 = vrot.lane.b32.xlu0 %v686_v46, %s2623_s9 }
 0x11d   : > { %v3257_v45 = vpop.permute.xlu1 %1553  ;;  %v3268_v26 = vpop.permute.xlu0 %1551 }
 0x11e   : > { %762 = vrot.lane.b32.xlu1 %v753_v8, %s2621_s21  ;;  %v948_v8 = vmul.f32 %v942_v14, %v3087_v43  ;;  %v1223_v14 = vrot.slane %v3200_v30, 4 }
 0x11f   : > { %756 = vrot.lane.b32.xlu0 %v745_v17, %s2621_s21  ;;  %v1012_v17 = vsel %vm1009_vm12, %v1011_v42, %v3169_v20  ;;  %v1018_v20 = vmul.f32 %v1008_v11, %v981_v22  ;;  %v1156_v11 = vrot.slane %v3194_v52, 4  ;;  %v1222_v42 = vrot.slane %v3202_v56, 4  ;;  %v1130_v22 = vld [vmem:[#allocation2 + $0x14] sm:$0xf] }
 0x120   : > { %v1017_v35 = vmul.f32 %v1012_v17, %v3097_v40 }
 0x121   : > { %v3271_v54 = vpop.permute.xlu1 %1619  ;;  %v3283_v33 = vpop.permute.xlu0 %1617  ;;  %v1024_v25 = vcombine.low %v1018_v20, %v1018_v20  ;;  %v1158_v17 = vsel %vm1103_vm14, %v1156_v11, %v3194_v52  ;;  %v3390_v20 = vld [vmem:[#allocation2 + $0x4] sm:$0xff] }
 0x122   : > { %621 = vrot.lane.b32.xlu1 %v618_v15, %s2624_s28  ;;  %v954_v15 = vcombine.high %v948_v8, %v948_v8  ;;  %v1023_v39 = vcombine.low %v1017_v35, %v1017_v35 }
 0x123   : > { %760 = vrot.lane.b32.xlu0 %v746_v16, %s2621_s21  ;;  %v887_v16 = vcombine.low %v881_v38, %v881_v38 }
 0x125   : > { %v3288_v5 = vpop.permute.xlu1 %1686  ;;  %v3298_v7 = vpop.permute.xlu0 %1684 }
 0x126   : > { %754 = vrot.lane.b32.xlu1 %v751_v47, %s2621_s21 }
 0x127   : > { %554 = vrot.lane.b32.xlu0 %v3179_v23, %s2625_s29  ;;  %v880_v23 = vmul.f32 %v875_v32, %v3097_v40  ;;  %v1077_v32 = vrot.slane %v3183_v41, 4 }
 0x129   : > { %v886_v59 = vcombine.low %v880_v23, %v880_v23  ;;  %v3300_v21 = vpop.permute.xlu1 %1752  ;;  %v3314_v60 = vpop.permute.xlu0 %1750 }
 0x12a   : > { %824 = vrot.lane.b32.xlu1 %v813_v53, %s2622_s23  ;;  %v1016_v53 = vmul.f32 %v1010_v49, %v3087_v43 }
 0x12b   : > { %687 = vrot.lane.b32.xlu0 %v679_v10, %s2623_s9  ;;  %v943_v10 = vsel %vm266_vm1, %v939_v31, %v940_v18 }
 0x12c   : > { %v944_v6 = vsel %vm3863_vm11, %v943_v10, %v3156_v55  ;;  %v1022_v31 = vcombine.low %v1016_v53, %v1016_v53  ;;  %v1157_v10 = vrot.slane %v3192_v51, 4  ;;  %vm898_vm11 = vcmask 72704  }
 0x12d   : > { %v949_v46 = vmul.f32 %v944_v6, %v3097_v40  ;;  %v3317_v55 = vpop.permute.xlu1 %1819  ;;  %v3323_v37 = vpop.permute.xlu0 %1817 }
 0x12e   : > { %828 = vrot.lane.b32.xlu1 %v814_v57, %s2622_s23  ;;  %v1076_v57 = vrot.slane %v3185_v44, 4 }
 0x12f   : > { %822 = vrot.lane.b32.xlu0 %v818_v27, %s2622_s23  ;;  %v955_v48 = vcombine.high %v949_v46, %v949_v46  ;;  %v3342_v27 = vld [vmem:[#allocation2 + $0x4] sm:$0xff] }
 0x130   : > { %v1080_v58 = vsel %vm266_vm1, %v1076_v57, %v1077_v32  ;;  %1125 = vst [vmem:[#allocation3 + $0xc8] sm:$0xf0] %v3342_v27  ;;  %v1079_v9 = vsel %vm1078_vm13, %v1076_v57, %v3185_v44  ;;  %v1159_v44 = vsel %vm266_vm1, %v1156_v11, %v1157_v10 }
 0x131   : > { %v3325_v47 = vpop.permute.xlu1 %1885  ;;  %v3332_v24 = vpop.permute.xlu0 %1883  ;;  %v1160_v50 = vsel %vm1103_vm14, %v1159_v44, %v3192_v51  ;;  %v1164_v51 = vmul.f32 %v3390_v20, %v1158_v17  ;;  %v1290_v44 = vrot.slane %v3214_v62, 4 }
 0x132   : > { %892 = vrot.lane.b32.xlu1 %v886_v59, %s2637_s5  ;;  %v1081_v59 = vsel %vm1078_vm13, %v1080_v58, %v3183_v41 }
 0x133   : > { %826 = vrot.lane.b32.xlu0 %v819_v63, %s2622_s23  ;;  %v1121_v63 = vcombine.low %v3059_v4, %v3059_v4  ;;  %v1086_v41 = vmul.f32 %v1081_v59, %v3097_v40  ;;  %v1170_v57 = vcombine.high %v1164_v51, %v1164_v51 }
 0x135   : > { %v3344_v18 = vpop.permute.xlu0 %1950  ;;  %1126 = vst [vmem:[#allocation3 + $0xd0] sm:$0xf0] %v1121_v63  ;;  %v1289_v63 = vrot.slane %v3221_v1, 4 }
 0x136   : > { %896 = vrot.lane.b32.xlu1 %v887_v16, %s2637_s5  ;;  %v1050_v16 = vld [vmem:[#allocation2 + $0x10] sm:$0xf] }
 0x137   : > { %890 = vrot.lane.b32.xlu0 %v879_v3, %s2637_s5  ;;  %v3365_v3 = vmul.f32 %v1079_v9, %v3087_v43 }
 0x139   : > { %v1091_v43 = vcombine.high %v3365_v3, %v3365_v3 }
 0x13a   : > { %960 = vrot.lane.b32.xlu1 %v949_v46, %s2636_s11 }
 0x13b   : > { %894 = vrot.lane.b32.xlu0 %v880_v23, %s2637_s5  ;;  %v3337_v23 = vpop.permute.xlu1 %1952 }
 0x13e   : > { %964 = vrot.lane.b32.xlu1 %v950_v61, %s2636_s11  ;;  %v1225_v61 = vsel %vm266_vm1, %v1222_v42, %v1223_v14 }
 0x13f   : > { %958 = vrot.lane.b32.xlu0 %v954_v15, %s2636_s11  ;;  %v1226_v52 = vsel %vm1035_vm15, %v1225_v61, %v3200_v30  ;;  %v1292_v61 = vsel %vm266_vm1, %v1289_v63, %v1290_v44 }
 0x142   : > { %1029 = vrot.lane.b32.xlu1 %v1023_v39, %s2635_s13 }
 0x143   : > { %962 = vrot.lane.b32.xlu0 %v955_v48, %s2636_s11  ;;  %v1092_v48 = vcombine.high %v1086_v41, %v1086_v41 }
 0x146   : > { %1033 = vrot.lane.b32.xlu1 %v1024_v25, %s2635_s13  ;;  %v1166_v25 = vmul.f32 %v1157_v10, %v1130_v22  ;;  %v1293_v22 = vsel %vm966_vm10, %v1292_v61, %v3214_v62 }
 0x147   : > { %1027 = vrot.lane.b32.xlu0 %v1016_v53, %s2635_s13 }
 0x149   : > { %v3367_v6 = vpop.permute.xlu0 %351 }
 0x14a   : > { %888 = vrot.lane.b32.xlu1 %v885_v28, %s2637_s5  ;;  %v1196_v28 = vld [vmem:[#allocation2 + $0x14] sm:$0xf] }
 0x14b   : > { %1031 = vrot.lane.b32.xlu0 %v1017_v35, %s2635_s13  ;;  %v3387_v35 = vld [vmem:[#allocation2 + $0xc] sm:$0xff]  ;;  %v1232_v30 = vmul.f32 %v1223_v14, %v1196_v28 }
 0x14c   : > { %v3348_v38 = vpop.permute.xlu1 %288  ;;  %v1165_v15 = vmul.f32 %v3387_v35, %v1160_v50 }
 0x14e   : > { %1025 = vrot.lane.b32.xlu1 %v1022_v31, %s2635_s13  ;;  %v1171_v10 = vcombine.high %v1165_v15, %v1165_v15 }
 0x14f   : > { %820 = vrot.lane.b32.xlu0 %v3274_v29, %s2622_s23  ;;  %v1087_v29 = vmul.f32 %v1077_v32, %v1050_v16  ;;  %v1231_v32 = vmul.f32 %v3387_v35, %v1226_v52  ;;  %v1224_v16 = vsel %vm1035_vm15, %v1222_v42, %v3202_v56  ;;  %v1291_v56 = vsel %vm966_vm10, %v1289_v63, %v3221_v1 }
 0x150   : > { %v3361_v2 = vpop.permute.xlu1 %425  ;;  %v3431_v1 = vmul.f32 %v3390_v20, %v1291_v56 }
 0x151   : > { %v1237_v59 = vcombine.low %v1231_v32, %v1231_v32 }
 0x152   : > { %1097 = vrot.lane.b32.xlu1 %v1086_v41, %s2634_s12  ;;  %v1120_v41 = vcombine.low %v3342_v27, %v3342_v27  ;;  %v1230_v27 = vmul.f32 %v3390_v20, %v1224_v16 }
 0x153   : > { %956 = vrot.lane.b32.xlu0 %v948_v8, %s2636_s11  ;;  %s3875_s11 = smov 119  }
 0x154   : > { %v3374_v46 = vpop.permute.xlu1 %284  ;;  %1124 = vst [vmem:[#allocation3 + $0xc0] sm:$0xf0] %v1120_v41 }
 0x155   : > { %v3378_v40 = vpop.permute.xlu0 %488 }
 0x156   : > { %1101 = vrot.lane.b32.xlu1 %v1087_v29, %s2634_s12  ;;  %v1238_v29 = vcombine.low %v1232_v30, %v1232_v30  ;;  %v1355_v30 = vrot.slane %v3232_v34, 4 }
 0x157   : > { %1095 = vrot.lane.b32.xlu0 %v1091_v43, %s2634_s12 }
 0x158   : > { %v358_v8 = vpop.permute.xlu1 %357 }
 0x159   : > { %v356_v39 = vpop.permute.xlu0 %355 }
 0x15a   : > { %v363_v49 = vsel %vm359_vm8, %v356_v39, %v358_v8  ;;  %1176 = vrot.lane.b32.xlu1 %v1165_v15, %s2633_s8 }
 0x15b   : > { %371 = vst [vmem:[#allocation3 + $0x18] sm:$0xf0] %v363_v49  ;;  %1099 = vrot.lane.b32.xlu0 %v1092_v48, %s2634_s12 }
 0x15c   : > { %v422_v53 = vpop.permute.xlu1 %421 }
 0x15d   : > { %v493_v58 = vpop.permute.xlu0 %492 }
 0x15e   : > { %1180 = vrot.lane.b32.xlu1 %v1166_v25, %s2633_s8 }
 0x15f   : > { %1174 = vrot.lane.b32.xlu0 %v1170_v57, %s2633_s8  ;;  %v1303_v57 = vcombine.high %v3431_v1, %v3431_v1 }
 0x160   : > { %v495_v31 = vpop.permute.xlu1 %494 }
 0x161   : > { %v500_v9 = vsel %vm496_vm6, %v493_v58, %v495_v31  ;;  %v3403_v11 = vpop.permute.xlu0 %282 }
 0x162   : > { %508 = vst [vmem:[#allocation3 + $0x38] sm:$0xf0] %v500_v9  ;;  %v292_v14 = vsel %vm290_vm9, %v3403_v11, %v3374_v46  ;;  %1243 = vrot.lane.b32.xlu1 %v1237_v59, %s2632_s26  ;;  %v1357_v9 = vsel %vm898_vm11, %v1355_v30, %v3232_v34 }
 0x163   : > { %300 = vst [vmem:[#allocation3 + $0x8] sm:$0xf] %v292_v14  ;;  %1178 = vrot.lane.b32.xlu0 %v1171_v10, %s2633_s8  ;;  %v1422_v10 = vrot.slane %v3242_v0, 4  ;;  %v3469_v34 = vmul.f32 %v3390_v20, %v1357_v9 }
 0x164   : > { %v354_v43 = vpop.permute.xlu1 %353 }
 0x165   : > { %v361_v42 = vsel %vm359_vm8, %v3367_v6, %v354_v43  ;;  %v362_v50 = vsel %vm359_vm8, %v354_v43, %v356_v39  ;;  %v3421_v17 = vpop.permute.xlu0 %419  ;;  %v1424_v56 = vsel %vm264_vm2, %v1422_v10, %v3242_v0 }
 0x166   : > { %369 = vst [vmem:[#allocation3 + $0x8] sm:$0xf0] %v361_v42  ;;  %370 = vst [vmem:[#allocation3 + $0x10] sm:$0xf0] %v362_v50  ;;  %v429_v8 = vsel %vm427_vm7, %v3421_v17, %v422_v53  ;;  %1247 = vrot.lane.b32.xlu1 %v1238_v29, %s2632_s26  ;;  %v1423_v29 = vrot.slane %v3235_v19, 4 }
 0x167   : > { %437 = vst [vmem:[#allocation3 + $0x28] sm:$0xf] %v429_v8  ;;  %1241 = vrot.lane.b32.xlu0 %v1230_v27, %s2632_s26 }
 0x168   : > { %v491_v15 = vpop.permute.xlu1 %490  ;;  %v1425_v61 = vsel %vm266_vm1, %v1422_v10, %v1423_v29 }
 0x169   : > { %v498_v52 = vsel %vm496_vm6, %v3378_v40, %v491_v15  ;;  %v499_v39 = vsel %vm496_vm6, %v491_v15, %v493_v58  ;;  %v287_v48 = vpop.permute.xlu0 %286  ;;  %v1298_v58 = vmul.f32 %v3387_v35, %v1293_v22 }
 0x16a   : > { %506 = vst [vmem:[#allocation3 + $0x28] sm:$0xf0] %v498_v52  ;;  %507 = vst [vmem:[#allocation3 + $0x30] sm:$0xf0] %v499_v39  ;;  %v293_v49 = vsel %vm290_vm9, %v3374_v46, %v287_v48  ;;  %v294_v25 = vsel %vm290_vm9, %v287_v48, %v3348_v38  ;;  %1172 = vrot.lane.b32.xlu1 %v1164_v51, %s2633_s8  ;;  %v1356_v38 = vrot.slane %v3227_v12, 4 }
 0x16b   : > { %301 = vst [vmem:[#allocation3 + $0x10] sm:$0xf] %v293_v49  ;;  %302 = vst [vmem:[#allocation3 + $0x18] sm:$0xf] %v294_v25  ;;  %1245 = vrot.lane.b32.xlu0 %v1231_v32, %s2632_s26  ;;  %v1304_v63 = vcombine.high %v1298_v58, %v1298_v58  ;;  %v1426_v25 = vsel %vm264_vm2, %v1425_v61, %v3235_v19 }
 0x16c   : > { %v350_v28 = vpop.permute.xlu1 %349  ;;  %v1358_v14 = vsel %vm266_vm1, %v1355_v30, %v1356_v38 }
 0x16d   : > { %v360_v46 = vsel %vm359_vm8, %v350_v28, %v3367_v6  ;;  %v424_v31 = vpop.permute.xlu0 %423  ;;  %v1236_v6 = vcombine.low %v1230_v27, %v1230_v27  ;;  %v1263_v27 = vld [vmem:[#allocation2 + $0x14] sm:$0xf] }
 0x16e   : > { %368 = vst [vmem:[#allocation3] sm:$0xf0] %v360_v46  ;;  %v430_v51 = vsel %vm427_vm7, %v422_v53, %v424_v31  ;;  %v431_v32 = vsel %vm427_vm7, %v424_v31, %v3361_v2  ;;  %1307 = vrot.lane.b32.xlu1 %v1303_v57, %s2631_s7  ;;  %v1994_v2 = vld [vmem:[#allocation3 + $0x8] sm:$0xff]  ;;  %v1329_v28 = vld [vmem:[#allocation2 + $0x14] sm:$0xf]  ;;  %v1488_v46 = vrot.slane %v3251_v36, 4 }
 0x16f   : > { %438 = vst [vmem:[#allocation3 + $0x30] sm:$0xf] %v430_v51  ;;  %439 = vst [vmem:[#allocation3 + $0x38] sm:$0xf] %v431_v32  ;;  %1093 = vrot.lane.b32.xlu0 %v3365_v3, %s2634_s12  ;;  %v1365_v30 = vmul.f32 %v1356_v38, %v1329_v28  ;;  %v1489_v32 = vrot.slane %v3244_v13, 4 }
 0x170   : > { %v487_v59 = vpop.permute.xlu1 %486 }
 0x171   : > { %v497_v53 = vsel %vm496_vm6, %v487_v59, %v3378_v40  ;;  %v281_v41 = vpop.permute.xlu0 %280  ;;  %v1998_v16 = vld [vmem:[#allocation3 + $0x28] sm:$0xff] }
 0x172   : > { %505 = vst [vmem:[#allocation3 + $0x20] sm:$0xf0] %v497_v53  ;;  %v291_v3 = vsel %vm290_vm9, %v281_v41, %v3403_v11  ;;  %1311 = vrot.lane.b32.xlu1 %v1304_v63, %s2631_s7  ;;  %v2342_v43 = vpack.c.bf16 %v1998_v16, %v1994_v2  ;;  %v1996_v50 = vld [vmem:[#allocation3 + $0x18] sm:$0xff]  ;;  %v1359_v11 = vsel %vm898_vm11, %v1358_v14, %v3227_v12  ;;  %v1995_v22 = vld [vmem:[#allocation3 + $0x10] sm:$0xff] }
 0x173   : > { %299 = vst [vmem:[#allocation3] sm:$0xf] %v291_v3  ;;  %1239 = vrot.lane.b32.xlu0 %v1236_v6, %s2632_s26  ;;  %v3484_v12 = vmul.f32 %v3390_v20, %v1424_v56  ;;  %v1364_v49 = vmul.f32 %v3387_v35, %v1359_v11  ;;  %v1371_v41 = vcombine.low %v1365_v30, %v1365_v30  ;;  %s2224_s26 = scalar_lea.sflag [#allocation6], %s2802_s25 }
 0x174   : > { %v559_v40 = vpop.permute.xlu1 %558  ;;  %2343 = vmatprep.subr.bf16.mxu0 %v2342_v43  ;;  %v1490_v2 = vsel %vm333_vm0, %v1488_v46, %v3251_v36  ;;  %v1491_v14 = vsel %vm266_vm1, %v1488_v46, %v1489_v32  ;;  %v1396_v36 = vld [vmem:[#allocation2 + $0x14] sm:$0xf] }
 0x175   : > { %v418_v42 = vpop.permute.xlu0 %417  ;;  %v1436_v62 = vcombine.high %v3484_v12, %v3484_v12  ;;  %v1370_v51 = vcombine.low %v1364_v49, %v1364_v49  ;;  %v3513_v43 = vmul.f32 %v3390_v20, %v1490_v2  ;;  %v1492_v56 = vsel %vm333_vm0, %v1491_v14, %v3244_v13 }
 0x176   : > { %v428_v8 = vsel %vm427_vm7, %v418_v42, %v3421_v17  ;;  %1374 = vrot.lane.b32.xlu1 %v3469_v34, %s3875_s11  ;;  %v2000_v15 = vld [vmem:[#allocation3 + $0x38] sm:$0xff]  ;;  %v1999_v52 = vld [vmem:[#allocation3 + $0x30] sm:$0xff]  ;;  %v1299_v17 = vmul.f32 %v1290_v44, %v1263_v27  ;;  %v1431_v44 = vmul.f32 %v1426_v25, %v3059_v4  ;;  %v1497_v61 = vmul.f32 %v1492_v56, %v3059_v4 }
 0x177   : > { %436 = vst [vmem:[#allocation3 + $0x20] sm:$0xf] %v428_v8  ;;  %1309 = vrot.lane.b32.xlu0 %v1298_v58, %s2631_s7  ;;  %v2372_v0 = vpack.c.bf16 %v2000_v15, %v1996_v50  ;;  %v2374_v39 = vpack.c.bf16 %v1999_v52, %v1995_v22  ;;  %v1432_v8 = vmul.f32 %v1423_v29, %v1396_v36  ;;  %v1555_v13 = vrot.slane %v3268_v26, 4  ;;  %v1462_v22 = vld [vmem:[#allocation2 + $0x14] sm:$0xf] }
 0x178   : > { %v563_v48 = vpop.permute.xlu1 %562  ;;  %v1437_v53 = vcombine.high %v1431_v44, %v1431_v44  ;;  %v1556_v52 = vrot.slane %v3257_v45, 4 }
 0x179   : > { %2373 = vmatprep.subr.bf16.mxu1 %v2372_v0  ;;  %v3491_v57 = vpop.permute.xlu0 %556  ;;  %v1557_v19 = vsel %vm402_vm4, %v1555_v13, %v3268_v26 }
 0x17a   : > { %v565_v58 = vsel %vm539_vm5, %v3491_v57, %v559_v40  ;;  %1378 = vrot.lane.b32.xlu1 %v1364_v49, %s3875_s11  ;;  %2375 = vmatpush1.bf16.msra.mxu1 %v2374_v39  ;;  %v1993_v6 = vld [vmem:[#allocation3] sm:$0xff]  ;;  %v1503_v49 = vcombine.low %v1497_v61, %v1497_v61 }
 0x17b   : > { %573 = vst [vmem:[#allocation3 + $0x48] sm:$0xf] %v565_v58  ;;  %1313 = vrot.lane.b32.xlu0 %v1299_v17, %s2631_s7  ;;  %v1558_v17 = vsel %vm266_vm1, %v1555_v13, %v1556_v52  ;;  %v3544_v58 = vmul.f32 %v3390_v20, %v1557_v19 }
 0x17c   : > { %v626_v35 = vpop.permute.xlu1 %625 }
 0x17d   : > { %v561_v31 = vpop.permute.xlu0 %560 }
 0x17e   : > { %v566_v59 = vsel %vm539_vm5, %v559_v40, %v561_v31  ;;  %v567_v63 = vsel %vm539_vm5, %v561_v31, %v563_v48  ;;  %1440 = vrot.lane.b32.xlu1 %v1436_v62, %s2629_s6  ;;  %v1997_v9 = vld [vmem:[#allocation3 + $0x20] sm:$0xff]  ;;  %v1498_v48 = vmul.f32 %v1489_v32, %v1462_v22  ;;  %v1621_v32 = vrot.slane %v3283_v33, 4 }
 0x17f   : > { %574 = vst [vmem:[#allocation3 + $0x50] sm:$0xf] %v566_v59  ;;  %575 = vst [vmem:[#allocation3 + $0x58] sm:$0xf] %v567_v63  ;;  %1376 = vrot.lane.b32.xlu0 %v1370_v51, %s3875_s11  ;;  %v2344_v10 = vpack.c.bf16 %v1997_v9, %v1993_v6  ;;  %v1369_v51 = vcombine.low %v3469_v34, %v3469_v34  ;;  %v1622_v6 = vrot.slane %v3271_v54, 4 }
 0x180   : > { %v630_v38 = vpop.permute.xlu1 %629  ;;  %v1504_v62 = vcombine.low %v1498_v48, %v1498_v48 }
 0x181   : > { %2345 = vmatpush1.bf16.msra.mxu0 %v2344_v10  ;;  %v624_v16 = vpop.permute.xlu0 %623  ;;  %v1624_v14 = vsel %vm266_vm1, %v1621_v32, %v1622_v6 }
 0x182   : > { %v632_v3 = vsel %vm470_vm3, %v624_v16, %v626_v35  ;;  %1444 = vrot.lane.b32.xlu1 %v1437_v53, %s2629_s6  ;;  %v1623_v53 = vsel %vm470_vm3, %v1621_v32, %v3283_v33 }
 0x183   : > { %640 = vst [vmem:[#allocation3 + $0x48] sm:$0xf0] %v632_v3  ;;  %1380 = vrot.lane.b32.xlu0 %v1371_v41, %s3875_s11  ;;  %v1688_v41 = vrot.slane %v3298_v7, 4  ;;  %v1689_v3 = vrot.slane %v3288_v5, 4  ;;  %v3577_v56 = vmul.f32 %v3390_v20, %v1623_v53 }
 0x184   : > { %v692_v40 = vpop.permute.xlu1 %691 }
 0x185   : > { %v628_v27 = vpop.permute.xlu0 %627 }
 0x186   : > { %v633_v42 = vsel %vm470_vm3, %v626_v35, %v628_v27  ;;  %v634_v50 = vsel %vm470_vm3, %v628_v27, %v630_v38  ;;  %1507 = vrot.lane.b32.xlu1 %v3513_v43, %s2628_s20  ;;  %v1559_v35 = vsel %vm402_vm4, %v1558_v17, %v3257_v45  ;;  %v1502_v38 = vcombine.low %v3513_v43, %v3513_v43 }
 0x187   : > { %641 = vst [vmem:[#allocation3 + $0x50] sm:$0xf0] %v633_v42  ;;  %642 = vst [vmem:[#allocation3 + $0x58] sm:$0xf0] %v634_v50  ;;  %1442 = vrot.lane.b32.xlu0 %v1431_v44, %s2629_s6  ;;  %v1564_v31 = vmul.f32 %v1559_v35, %v3059_v4  ;;  %v1529_v42 = vld [vmem:[#allocation2 + $0x14] sm:$0xf]  ;;  %v1690_v50 = vsel %vm539_vm5, %v1688_v41, %v3298_v7 }
 0x188   : > { %v696_v11 = vpop.permute.xlu1 %695  ;;  %v1754_v35 = vrot.slane %v3314_v60, 4 }
 0x189   : > { %v3526_v15 = vpop.permute.xlu0 %689  ;;  %v1570_v34 = vcombine.high %v1564_v31, %v1564_v31 }
 0x18a   : > { %v698_v0 = vsel %vm402_vm4, %v3526_v15, %v692_v40  ;;  %1511 = vrot.lane.b32.xlu1 %v1497_v61, %s2628_s20  ;;  %v2002_v27 = vld [vmem:[#allocation3 + $0x48] sm:$0xff] }
 0x18b   : > { %706 = vst [vmem:[#allocation3 + $0x68] sm:$0xf] %v698_v0  ;;  %1446 = vrot.lane.b32.xlu0 %v1432_v8, %s2629_s6  ;;  %v1691_v8 = vsel %vm266_vm1, %v1688_v41, %v1689_v3 }
 0x18c   : > { %v759_v39 = vpop.permute.xlu1 %758 }
 0x18d   : > { %v694_v29 = vpop.permute.xlu0 %693 }
 0x18e   : > { %v699_v25 = vsel %vm402_vm4, %v692_v40, %v694_v29  ;;  %v700_v28 = vsel %vm402_vm4, %v694_v29, %v696_v11  ;;  %1305 = vrot.lane.b32.xlu1 %v3431_v1, %s2631_s7  ;;  %v1569_v1 = vcombine.high %v3544_v58, %v3544_v58  ;;  %v2004_v61 = vld [vmem:[#allocation3 + $0x58] sm:$0xff]  ;;  %v2003_v0 = vld [vmem:[#allocation3 + $0x50] sm:$0xff] }
 0x18f   : > { %707 = vst [vmem:[#allocation3 + $0x70] sm:$0xf] %v699_v25  ;;  %708 = vst [vmem:[#allocation3 + $0x78] sm:$0xf] %v700_v28  ;;  %1509 = vrot.lane.b32.xlu0 %v1503_v49, %s2628_s20  ;;  %v1692_v49 = vsel %vm539_vm5, %v1691_v8, %v3288_v5  ;;  %v1595_v25 = vld [vmem:[#allocation2 + $0x14] sm:$0xf] }
 0x190   : > { %v763_v26 = vpop.permute.xlu1 %762 }
 0x191   : > { %v757_v44 = vpop.permute.xlu0 %756 }
 0x192   : > { %v765_v30 = vsel %vm333_vm0, %v757_v44, %v759_v39  ;;  %1438 = vrot.lane.b32.xlu1 %v3484_v12, %s2629_s6 }
 0x193   : > { %773 = vst [vmem:[#allocation3 + $0x68] sm:$0xf0] %v765_v30  ;;  %1513 = vrot.lane.b32.xlu0 %v1504_v62, %s2628_s20  ;;  %v1631_v62 = vmul.f32 %v1622_v6, %v1595_v25  ;;  %v1635_v25 = vcombine.low %v3577_v56, %v3577_v56 }
 0x194   : > { %v622_v46 = vpop.permute.xlu1 %621 }
 0x195   : > { %v631_v59 = vsel %vm470_vm3, %v622_v46, %v624_v16  ;;  %v761_v63 = vpop.permute.xlu0 %760 }
 0x196   : > { %639 = vst [vmem:[#allocation3 + $0x40] sm:$0xf0] %v631_v59  ;;  %v766_v12 = vsel %vm333_vm0, %v759_v39, %v761_v63  ;;  %v767_v9 = vsel %vm333_vm0, %v761_v63, %v763_v26  ;;  %1573 = vrot.lane.b32.xlu1 %v1569_v1, %s2627_s14  ;;  %v1697_v26 = vmul.f32 %v1692_v49, %v3059_v4  ;;  %v1755_v1 = vrot.slane %v3300_v21, 4 }
 0x197   : > { %774 = vst [vmem:[#allocation3 + $0x70] sm:$0xf0] %v766_v12  ;;  %775 = vst [vmem:[#allocation3 + $0x78] sm:$0xf0] %v767_v9  ;;  %1372 = vrot.lane.b32.xlu0 %v1369_v51, %s3875_s11  ;;  %v1637_v12 = vcombine.low %v1631_v62, %v1631_v62  ;;  %v1756_v9 = vsel %vm496_vm6, %v1754_v35, %v3314_v60  ;;  %v1662_v60 = vld [vmem:[#allocation2 + $0x14] sm:$0xf] }
 0x198   : > { %v755_v10 = vpop.permute.xlu1 %754  ;;  %v1703_v6 = vcombine.high %v1697_v26, %v1697_v26  ;;  %v3621_v53 = vmul.f32 %v3390_v20, %v1756_v9 }
 0x199   : > { %v764_v2 = vsel %vm333_vm0, %v755_v10, %v757_v44  ;;  %v555_v16 = vpop.permute.xlu0 %554 }
 0x19a   : > { %772 = vst [vmem:[#allocation3 + $0x60] sm:$0xf0] %v764_v2  ;;  %v564_v40 = vsel %vm539_vm5, %v555_v16, %v3491_v57  ;;  %1577 = vrot.lane.b32.xlu1 %v1570_v34, %s2627_s14  ;;  %v2006_v43 = vld [vmem:[#allocation3 + $0x68] sm:$0xff]  ;;  %v1625_v57 = vsel %vm470_vm3, %v1624_v14, %v3271_v54  ;;  %v3592_v54 = vmul.f32 %v3390_v20, %v1690_v50  ;;  %v1822_v50 = vrot.slane %v3317_v55, 4 }
 0x19b   : > { %572 = vst [vmem:[#allocation3 + $0x40] sm:$0xf] %v564_v40  ;;  %1505 = vrot.lane.b32.xlu0 %v1502_v38, %s2628_s20  ;;  %v2346_v33 = vpack.c.bf16 %v2006_v43, %v2002_v27  ;;  %v1630_v29 = vmul.f32 %v1625_v57, %v3059_v4  ;;  %v1757_v34 = vsel %vm266_vm1, %v1754_v35, %v1755_v1 }
 0x19c   : > { %v825_v36 = vpop.permute.xlu1 %824  ;;  %v1702_v45 = vcombine.high %v3592_v54, %v3592_v54  ;;  %v1758_v16 = vsel %vm496_vm6, %v1757_v34, %v3300_v21  ;;  %v1821_v21 = vrot.slane %v3323_v37, 4 }
 0x19d   : > { %2347 = vmatprep.subr.bf16.mxu0 %v2346_v33  ;;  %v688_v11 = vpop.permute.xlu0 %687  ;;  %v1636_v30 = vcombine.low %v1630_v29, %v1630_v29  ;;  %v1763_v43 = vmul.f32 %v1758_v16, %v3059_v4  ;;  %v1698_v33 = vmul.f32 %v1689_v3, %v1662_v60 }
 0x19e   : > { %v697_v13 = vsel %vm402_vm4, %v688_v11, %v3526_v15  ;;  %1640 = vrot.lane.b32.xlu1 %v3577_v56, %s2626_s10  ;;  %v2008_v22 = vld [vmem:[#allocation3 + $0x78] sm:$0xff]  ;;  %v2007_v39 = vld [vmem:[#allocation3 + $0x70] sm:$0xff]  ;;  %v1565_v15 = vmul.f32 %v1556_v52, %v1529_v42  ;;  %v1823_v5 = vsel %vm427_vm7, %v1821_v21, %v3323_v37 }
 0x19f   : > { %705 = vst [vmem:[#allocation3 + $0x60] sm:$0xf] %v697_v13  ;;  %1575 = vrot.lane.b32.xlu0 %v1564_v31, %s2627_s14  ;;  %v2376_v7 = vpack.c.bf16 %v2008_v22, %v2004_v61  ;;  %v2378_v48 = vpack.c.bf16 %v2007_v39, %v2003_v0  ;;  %v1728_v42 = vld [vmem:[#allocation2 + $0x14] sm:$0xf]  ;;  %v1769_v8 = vcombine.low %v1763_v43, %v1763_v43 }
 0x1a0   : > { %v829_v19 = vpop.permute.xlu1 %828  ;;  %v1764_v57 = vmul.f32 %v1755_v1, %v1728_v42  ;;  %v1824_v13 = vsel %vm266_vm1, %v1821_v21, %v1822_v50  ;;  %v3652_v39 = vmul.f32 %v3390_v20, %v1823_v5  ;;  %v1954_v1 = vrot.slane %v3344_v18, 4  ;;  %v1861_v42 = vld [vmem:[#allocation2 + $0x14] sm:$0xf] }
 0x1a1   : > { %2377 = vmatprep.subr.bf16.mxu1 %v2376_v7  ;;  %v3599_v17 = vpop.permute.xlu0 %822 }
 0x1a2   : > { %v831_v28 = vsel %vm264_vm2, %v3599_v17, %v825_v36  ;;  %1644 = vrot.lane.b32.xlu1 %v1630_v29, %s2626_s10  ;;  %2379 = vmatpush1.bf16.msra.mxu1 %v2378_v48  ;;  %v2001_v51 = vld [vmem:[#allocation3 + $0x40] sm:$0xff]  ;;  %v1770_v7 = vcombine.low %v1764_v57, %v1764_v57  ;;  %v1825_v48 = vsel %vm427_vm7, %v1824_v13, %v3317_v55 }
 0x1a3   : > { %839 = vst [vmem:[#allocation3 + $0x88] sm:$0xf] %v831_v28  ;;  %1579 = vrot.lane.b32.xlu0 %v1565_v15, %s2627_s14  ;;  %v1830_v49 = vmul.f32 %v1825_v48, %v3059_v4  ;;  %v1887_v28 = vrot.slane %v3332_v24, 4  ;;  %v1956_v34 = vsel %vm290_vm9, %v1954_v1, %v3344_v18 }
 0x1a4   : > { %v893_v52 = vpop.permute.xlu1 %892 }
 0x1a5   : > { %v827_v44 = vpop.permute.xlu0 %826  ;;  %v1836_v56 = vcombine.high %v1830_v49, %v1830_v49 }
 0x1a6   : > { %v832_v46 = vsel %vm264_vm2, %v825_v36, %v827_v44  ;;  %v833_v31 = vsel %vm264_vm2, %v827_v44, %v829_v19  ;;  %1706 = vrot.lane.b32.xlu1 %v1702_v45, %s2625_s29  ;;  %v2005_v32 = vld [vmem:[#allocation3 + $0x60] sm:$0xff]  ;;  %v1768_v44 = vcombine.low %v3621_v53, %v3621_v53 }
 0x1a7   : > { %840 = vst [vmem:[#allocation3 + $0x90] sm:$0xf] %v832_v46  ;;  %841 = vst [vmem:[#allocation3 + $0x98] sm:$0xf] %v833_v31  ;;  %1642 = vrot.lane.b32.xlu0 %v1636_v30, %s2626_s10  ;;  %v2348_v59 = vpack.c.bf16 %v2005_v32, %v2001_v51  ;;  %v1889_v30 = vsel %vm359_vm8, %v1887_v28, %v3332_v24  ;;  %v1955_v32 = vrot.slane %v3337_v23, 4 }
 0x1a8   : > { %v897_v63 = vpop.permute.xlu1 %896 }
 0x1a9   : > { %2349 = vmatpush1.bf16.msra.mxu0 %v2348_v59  ;;  %v891_v10 = vpop.permute.xlu0 %890 }
 0x1aa   : > { %v900_v38 = vsel %vm898_vm11, %v891_v10, %v893_v52  ;;  %1710 = vrot.lane.b32.xlu1 %v1703_v6, %s2625_s29 }
 0x1ab   : > { %908 = vst [vmem:[#allocation3 + $0x88] sm:$0xf0] %v900_v38  ;;  %1646 = vrot.lane.b32.xlu0 %v1637_v12, %s2626_s10  ;;  %v3685_v12 = vmul.f32 %v3390_v20, %v1889_v30  ;;  %v2049_v30 = vld [vmem:[%s3853_s2] sm:$0xf] }
 0x1ac   : > { %v961_v41 = vpop.permute.xlu1 %960 }
 0x1ad   : > { %v895_v2 = vpop.permute.xlu0 %894 }
 0x1ae   : > { %v901_v14 = vsel %vm898_vm11, %v893_v52, %v895_v2  ;;  %v902_v40 = vsel %vm898_vm11, %v895_v2, %v897_v63  ;;  %1773 = vrot.lane.b32.xlu1 %v3621_v53, %s2624_s28 }
 0x1af   : > { %909 = vst [vmem:[#allocation3 + $0x90] sm:$0xf0] %v901_v14  ;;  %910 = vst [vmem:[#allocation3 + $0x98] sm:$0xf0] %v902_v40  ;;  %1708 = vrot.lane.b32.xlu0 %v1697_v26, %s2625_s29  ;;  %v1888_v26 = vrot.slane %v3325_v47, 4 }
 0x1b0   : > { %v965_v27 = vpop.permute.xlu1 %964 }
 0x1b1   : > { %v3634_v36 = vpop.permute.xlu0 %958  ;;  %v1890_v51 = vsel %vm266_vm1, %v1887_v28, %v1888_v26 }
 0x1b2   : > { %v968_v11 = vsel %vm966_vm10, %v3634_v36, %v961_v41  ;;  %1777 = vrot.lane.b32.xlu1 %v1763_v43, %s2624_s28  ;;  %v2010_v63 = vld [vmem:[#allocation3 + $0x88] sm:$0xff] }
 0x1b3   : > { %976 = vst [vmem:[#allocation3 + $0xa8] sm:$0xf] %v968_v11  ;;  %1712 = vrot.lane.b32.xlu0 %v1698_v33, %s2625_s29 }
 0x1b4   : > { %v1030_v61 = vpop.permute.xlu1 %1029 }
 0x1b5   : > { %v963_v3 = vpop.permute.xlu0 %962 }
 0x1b6   : > { %v969_v22 = vsel %vm966_vm10, %v961_v41, %v963_v3  ;;  %v970_v0 = vsel %vm966_vm10, %v963_v3, %v965_v27  ;;  %1571 = vrot.lane.b32.xlu1 %v3544_v58, %s2627_s14  ;;  %v1835_v58 = vcombine.high %v3652_v39, %v3652_v39  ;;  %v2012_v53 = vld [vmem:[#allocation3 + $0x98] sm:$0xff]  ;;  %v1957_v41 = vsel %vm266_vm1, %v1954_v1, %v1955_v32  ;;  %v2011_v60 = vld [vmem:[#allocation3 + $0x90] sm:$0xff] }
 0x1b7   : > { %977 = vst [vmem:[#allocation3 + $0xb0] sm:$0xf] %v969_v22  ;;  %978 = vst [vmem:[#allocation3 + $0xb8] sm:$0xf] %v970_v0  ;;  %1775 = vrot.lane.b32.xlu0 %v1769_v8, %s2624_s28  ;;  %v1958_v21 = vsel %vm290_vm9, %v1957_v41, %v3337_v23 }
 0x1b8   : > { %v1034_v37 = vpop.permute.xlu1 %1033  ;;  %v1963_v55 = vmul.f32 %v1958_v21, %v3059_v4 }
 0x1b9   : > { %v1028_v19 = vpop.permute.xlu0 %1027 }
 0x1ba   : > { %v1037_v29 = vsel %vm1035_vm15, %v1028_v19, %v1030_v61  ;;  %1704 = vrot.lane.b32.xlu1 %v3592_v54, %s2625_s29  ;;  %s2341_s29 = sshll.u32 %s2687_s19, 8  ;;  %s2640_s19 = smov [#allocation9]  }
 0x1bb   : > { %1045 = vst [vmem:[#allocation3 + $0xa8] sm:$0xf0] %v1037_v29  ;;  %1779 = vrot.lane.b32.xlu0 %v1770_v7, %s2624_s28  ;;  %v1969_v7 = vcombine.high %v1963_v55, %v1963_v55  ;;  %s3807_s7 = scalar_lea.hbm %s3855_s4, %s2341_s29  ;;  %s2548_s12 = sshll.u32 %s2640_s19, 4  ;;  %s2549_s12 = int_to_ptr.vmem [resolvable:$false] %s2548_s12 }
 0x1bc   : > { %v889_v15 = vpop.permute.xlu1 %888  ;;  %s2550_s13 = scalar_lea.vmem %s2549_s12, 512 }
 0x1bd   : > { %v899_v45 = vsel %vm898_vm11, %v889_v15, %v891_v10  ;;  %v1032_v52 = vpop.permute.xlu0 %1031  ;;  %v1795_v10 = vld [vmem:[#allocation2 + $0x14] sm:$0xf] }
 0x1be   : > { %907 = vst [vmem:[#allocation3 + $0x80] sm:$0xf0] %v899_v45  ;;  %v1038_v54 = vsel %vm1035_vm15, %v1030_v61, %v1032_v52  ;;  %v1039_v62 = vsel %vm1035_vm15, %v1032_v52, %v1034_v37  ;;  %1839 = vrot.lane.b32.xlu1 %v1835_v58, %s2623_s9  ;;  %v1831_v33 = vmul.f32 %v1822_v50, %v1795_v10  ;;  %v1928_v15 = vld [vmem:[#allocation2 + $0x14] sm:$0xf] }
 0x1bf   : > { %1046 = vst [vmem:[#allocation3 + $0xb0] sm:$0xf0] %v1038_v54  ;;  %1047 = vst [vmem:[#allocation3 + $0xb8] sm:$0xf0] %v1039_v62  ;;  %1638 = vrot.lane.b32.xlu0 %v1635_v25, %s2626_s10  ;;  %v1897_v50 = vmul.f32 %v1888_v26, %v1861_v42  ;;  %v1964_v45 = vmul.f32 %v1955_v32, %v1928_v15  ;;  %s3885_s10 = sshll.u32 %s2802_s25, 4 }
 0x1c0   : > { %v1026_v35 = vpop.permute.xlu1 %1025  ;;  %s228_s14 = scalar_lea.vmem [#allocation9], %s3885_s10 }
 0x1c1   : > { %v1036_v46 = vsel %vm1035_vm15, %v1026_v35, %v1028_v19  ;;  %v821_v31 = vpop.permute.xlu0 %820  ;;  %v1903_v48 = vcombine.low %v1897_v50, %v1897_v50  ;;  %s2238_s20 = sshll.u32 %s228_s14, 4  ;;  %s3809_s20 = int_to_ptr.vmem [resolvable:$true] %s2238_s20 }
 0x1c2   : > { %1044 = vst [vmem:[#allocation3 + $0xa0] sm:$0xf0] %v1036_v46  ;;  %v830_v59 = vsel %vm264_vm2, %v821_v31, %v3599_v17  ;;  %1843 = vrot.lane.b32.xlu1 %v1836_v56, %s2623_s9  ;;  %v2014_v6 = vld [vmem:[#allocation3 + $0xa8] sm:$0xff]  ;;  %v1891_v17 = vsel %vm359_vm8, %v1890_v51, %v3325_v47  ;;  %v1962_v47 = vmul.f32 %v3390_v20, %v1956_v34  ;;  %v2638_v46 = vmov 0   ;;  %s2544_s8 = scalar_lea.vmem %s3809_s20, 256  ;;  %p2551_p10 = scmp.lt.s32.totalorder %s3809_s20, %s2549_s12 }
 0x1c3   : > { %838 = vst [vmem:[#allocation3 + $0x80] sm:$0xf] %v830_v59  ;;  %1771 = vrot.lane.b32.xlu0 %v1768_v44, %s2624_s28  ;;  %v2350_v24 = vpack.c.bf16 %v2014_v6, %v2010_v63  ;;  %v1896_v43 = vmul.f32 %v1891_v17, %v3059_v4  ;;  %p2545_p4 = scmp.ne.s32.totalorder %s3809_s20, %s2544_s8  ;;  %p2552_p13 = scmp.lt.s32.totalorder %s2550_s13, %s2544_s8 }
 0x1c4   : > { %v1098_v9 = vpop.permute.xlu1 %1097  ;;  %v1968_v20 = vcombine.high %v1962_v47, %v1962_v47  ;;  %2481 = vset.pattern.permute.xlu0 %v2638_v46 }
 0x1c5   : > { %2351 = vmatprep.subr.bf16.mxu0 %v2350_v24  ;;  %v957_v38 = vpop.permute.xlu0 %956  ;;  %v1902_v5 = vcombine.low %v1896_v43, %v1896_v43  ;;  %p2546_p6 = pnand %p2545_p4, %p2757_p12  ;;  %p2553_p3 = por %p2552_p13, %p2551_p10 }
 0x1c6   : > { %v967_v2 = vsel %vm966_vm10, %v957_v38, %v3634_v36  ;;  %1906 = vrot.lane.b32.xlu1 %v3685_v12, %s2621_s21  ;;  %v2016_v16 = vld [vmem:[#allocation3 + $0xb8] sm:$0xff]  ;;  %v2015_v14 = vld [vmem:[#allocation3 + $0xb0] sm:$0xff]  ;;  %vm3876_vm10 = vcmask 982016  }
 0x1c7   : > { %975 = vst [vmem:[#allocation3 + $0xa0] sm:$0xf] %v967_v2  ;;  %1841 = vrot.lane.b32.xlu0 %v1830_v49, %s2623_s9  ;;  %v2380_v18 = vpack.c.bf16 %v2016_v16, %v2012_v53  ;;  %v2382_v40 = vpack.c.bf16 %v2015_v14, %v2011_v60  ;;  %vm3877_vm11 = vmmov %vm3876_vm10  ;;  %p2547_p8 = pneg %p2546_p6 }
 0x1c8   : > { %v1102_v27 = vpop.permute.xlu1 %1101 }
 0x1c9   : > { %2381 = vmatprep.subr.bf16.mxu1 %v2380_v18  ;;  %v3705_v36 = vpop.permute.xlu0 %1095  ;;  %p2554_p7 = pnand %p2553_p3, %p2547_p8 }
 0x1ca   : > { %v1105_v11 = vsel %vm1103_vm14, %v3705_v36, %v1098_v9  ;;  %1910 = vrot.lane.b32.xlu1 %v1896_v43, %s2621_s21  ;;  %2383 = vmatpush1.bf16.msra.mxu1 %v2382_v40  ;;  %v2009_v13 = vld [vmem:[#allocation3 + $0x80] sm:$0xff] }
 0x1cb   : > { %1113 = vst [vmem:[#allocation3 + $0xc8] sm:$0xf] %v1105_v11  ;;  %1845 = vrot.lane.b32.xlu0 %v1831_v33, %s2623_s9 }
 0x1cc   : > { %v1177_v61 = vpop.permute.xlu1 %1176 }
 0x1cd   : > { %v1100_v57 = vpop.permute.xlu0 %1099 }
 0x1ce   : > { %v1106_v3 = vsel %vm1103_vm14, %v1098_v9, %v1100_v57  ;;  %v1107_v8 = vsel %vm1103_vm14, %v1100_v57, %v1102_v27  ;;  %1972 = vrot.lane.b32.xlu1 %v1968_v20, %s2622_s23  ;;  %v2013_v22 = vld [vmem:[#allocation3 + $0xa0] sm:$0xff] }
 0x1cf   : > { %1114 = vst [vmem:[#allocation3 + $0xd0] sm:$0xf] %v1106_v3  ;;  %1115 = vst [vmem:[#allocation3 + $0xd8] sm:$0xf] %v1107_v8  ;;  %1908 = vrot.lane.b32.xlu0 %v1902_v5, %s2621_s21  ;;  %v2352_v0 = vpack.c.bf16 %v2013_v22, %v2009_v13 }
 0x1d0   : > { %v1181_v37 = vpop.permute.xlu1 %1180 }
 0x1d1   : > { %2353 = vmatpush1.bf16.msra.mxu0 %v2352_v0  ;;  %v1175_v4 = vpop.permute.xlu0 %1174 }
 0x1d2   : > { %v1183_v19 = vsel %vm1078_vm13, %v1175_v4, %v1177_v61  ;;  %1976 = vrot.lane.b32.xlu1 %v1969_v7, %s2622_s23  ;;  %v2018_v51 = vld [vmem:[#allocation3 + $0xc8] sm:$0xff] }
 0x1d3   : > { %1191 = vst [vmem:[#allocation3 + $0xe8] sm:$0xf] %v1183_v19  ;;  %1912 = vrot.lane.b32.xlu0 %v1903_v48, %s2621_s21 }
 0x1d4   : > { %v1244_v29 = vpop.permute.xlu1 %1243 }
 0x1d5   : > { %v1179_v58 = vpop.permute.xlu0 %1178 }
 0x1d6   : > { %v1184_v49 = vsel %vm1078_vm13, %v1177_v61, %v1179_v58  ;;  %v1185_v25 = vsel %vm1078_vm13, %v1179_v58, %v1181_v37  ;;  %1837 = vrot.lane.b32.xlu1 %v3652_v39, %s2623_s9  ;;  %v1901_v39 = vcombine.low %v3685_v12, %v3685_v12  ;;  %v2020_v24 = vld [vmem:[#allocation3 + $0xd8] sm:$0xff]  ;;  %v2019_v10 = vld [vmem:[#allocation3 + $0xd0] sm:$0xff] }
 0x1d7   : > { %1192 = vst [vmem:[#allocation3 + $0xf0] sm:$0xf] %v1184_v49  ;;  %1193 = vst [vmem:[#allocation3 + $0xf8] sm:$0xf] %v1185_v25  ;;  %1974 = vrot.lane.b32.xlu0 %v1963_v55, %s2622_s23 }
 0x1d8   : > { %v1248_v28 = vpop.permute.xlu1 %1247 }
 0x1d9   : > { %v1242_v52 = vpop.permute.xlu0 %1241 }
 0x1da   : > { %v1250_v26 = vsel %vm1009_vm12, %v1242_v52, %v1244_v29  ;;  %1970 = vrot.lane.b32.xlu1 %v1962_v47, %s2622_s23 }
 0x1db   : > { %1258 = vst [vmem:[#allocation3 + $0xe8] sm:$0xf0] %v1250_v26  ;;  %1978 = vrot.lane.b32.xlu0 %v1964_v45, %s2622_s23 }
 0x1dc   : > { %v1173_v54 = vpop.permute.xlu1 %1172 }
 0x1dd   : > { %v1182_v62 = vsel %vm1078_vm13, %v1173_v54, %v1175_v4  ;;  %v1246_v35 = vpop.permute.xlu0 %1245  ;;  %vm3878_vm13 = vmmov %vm3876_vm10 }
 0x1de   : > { %1190 = vst [vmem:[#allocation3 + $0xe0] sm:$0xf] %v1182_v62  ;;  %v1251_v56 = vsel %vm1009_vm12, %v1244_v29, %v1246_v35  ;;  %v1252_v23 = vsel %vm1009_vm12, %v1246_v35, %v1248_v28 }
 0x1df   : > { %1259 = vst [vmem:[#allocation3 + $0xf0] sm:$0xf0] %v1251_v56  ;;  %1260 = vst [vmem:[#allocation3 + $0xf8] sm:$0xf0] %v1252_v23  ;;  %1904 = vrot.lane.b32.xlu0 %v1901_v39, %s2621_s21 }
 0x1e0   : > { %v1308_v44 = vpop.permute.xlu1 %1307 }
 0x1e1   : > { %v1094_v1 = vpop.permute.xlu0 %1093 }
 0x1e2   : > { %v1104_v31 = vsel %vm1103_vm14, %v1094_v1, %v3705_v36  ;;  %v2022_v32 = vld [vmem:[#allocation3 + $0xe8] sm:$0xff] }
 0x1e3   : > { %1112 = vst [vmem:[#allocation3 + $0xc0] sm:$0xf] %v1104_v31  ;;  %v2354_v59 = vpack.c.bf16 %v2022_v32, %v2018_v51  ;;  %2052 = vperm.xlu0 %2481, %v2049_v30  }
 0x1e4   : > { %v1312_v63 = vpop.permute.xlu1 %1311 }
 0x1e5   : > { %2355 = vmatprep.subr.bf16.mxu0 %v2354_v59  ;;  %v1240_v6 = vpop.permute.xlu0 %1239 }
 0x1e6   : > { %v1249_v12 = vsel %vm1009_vm12, %v1240_v6, %v1242_v52  ;;  %v2024_v9 = vld [vmem:[#allocation3 + $0xf8] sm:$0xff]  ;;  %v2023_v34 = vld [vmem:[#allocation3 + $0xf0] sm:$0xff]  ;;  %vm3879_vm12 = vcmask 973824  }
 0x1e7   : > { %1257 = vst [vmem:[#allocation3 + $0xe0] sm:$0xf0] %v1249_v12  ;;  %v2384_v38 = vpack.c.bf16 %v2024_v9, %v2020_v24  ;;  %v2386_v53 = vpack.c.bf16 %v2023_v34, %v2019_v10  ;;  %vm3880_vm14 = vmmov %vm3879_vm12 }
 0x1e8   : > { %v1375_v17 = vpop.permute.xlu1 %1374  ;;  %vm3881_vm15 = vmmov %vm3879_vm12 }
 0x1e9   : > { %2385 = vmatprep.subr.bf16.mxu1 %v2384_v38  ;;  %v1310_v41 = vpop.permute.xlu0 %1309 }
 0x1ea   : > { %v1316_v2 = vsel %vm3876_vm10, %v1308_v44, %v1310_v41  ;;  %v1317_v16 = vsel %vm3877_vm11, %v1310_v41, %v1312_v63  ;;  %2387 = vmatpush1.bf16.msra.mxu1 %v2386_v53  ;;  %v2017_v40 = vld [vmem:[#allocation3 + $0xc0] sm:$0xff]  ;;  %vm3882_vm11 = vmmov %vm3879_vm12 }
 0x1eb   : > { %1324 = vst [vmem:[#allocation3 + $0x108] sm:$0xf] %v1316_v2  ;;  %1325 = vst [vmem:[#allocation3 + $0x110] sm:$0xf] %v1317_v16 }
 0x1ec   : > { %v1379_v60 = vpop.permute.xlu1 %1378 }
 0x1ed   : > { %v1314_v14 = vpop.permute.xlu0 %1313 }
 0x1ee   : > { %v1318_v18 = vsel %vm3878_vm13, %v1312_v63, %v1314_v14  ;;  %v2021_v47 = vld [vmem:[#allocation3 + $0xe0] sm:$0xff] }
 0x1ef   : > { %1326 = vst [vmem:[#allocation3 + $0x118] sm:$0xf] %v1318_v18  ;;  %v2356_v27 = vpack.c.bf16 %v2021_v47, %v2017_v40 }
 0x1f0   : > { %v1441_v43 = vpop.permute.xlu1 %1440 }
 0x1f1   : > { %2357 = vmatpush1.bf16.msra.mxu0 %v2356_v27  ;;  %v1377_v33 = vpop.permute.xlu0 %1376 }
 0x1f2   : > { %v1383_v21 = vsel %vm3879_vm12, %v1375_v17, %v1377_v33  ;;  %v1384_v36 = vsel %vm3880_vm14, %v1377_v33, %v1379_v60 }
 0x1f3   : > { %1391 = vst [vmem:[#allocation3 + $0x108] sm:$0xf0] %v1383_v21  ;;  %1392 = vst [vmem:[#allocation3 + $0x110] sm:$0xf0] %v1384_v36 }
 0x1f4   : > { %v1445_v42 = vpop.permute.xlu1 %1444 }
 0x1f5   : > { %v1381_v11 = vpop.permute.xlu0 %1380 }
 0x1f6   : > { %v1385_v20 = vsel %vm3881_vm15, %v1379_v60, %v1381_v11 }
 0x1f7   : > { %1393 = vst [vmem:[#allocation3 + $0x118] sm:$0xf0] %v1385_v20 }
 0x1f8   : > { %v1508_v61 = vpop.permute.xlu1 %1507 }
 0x1f9   : > { %v1443_v55 = vpop.permute.xlu0 %1442 }
 0x1fa   : > { %v1449_v50 = vsel %vm290_vm9, %v1441_v43, %v1443_v55  ;;  %v1450_v57 = vsel %vm290_vm9, %v1443_v55, %v1445_v42  ;;  %v2026_v25 = vld [vmem:[#allocation3 + $0x108] sm:$0xff]  ;;  %v2027_v23 = vld [vmem:[#allocation3 + $0x110] sm:$0xff] }
 0x1fb   : > { %1457 = vst [vmem:[#allocation3 + $0x128] sm:$0xf] %v1449_v50  ;;  %1458 = vst [vmem:[#allocation3 + $0x130] sm:$0xf] %v1450_v57 }
 0x1fc   : > { %v1512_v5 = vpop.permute.xlu1 %1511 }
 0x1fd   : > { %v1447_v3 = vpop.permute.xlu0 %1446 }
 0x1fe   : > { %v1451_v8 = vsel %vm290_vm9, %v1445_v42, %v1447_v3  ;;  %v2028_v62 = vld [vmem:[#allocation3 + $0x118] sm:$0xff] }
 0x1ff   : > { %1459 = vst [vmem:[#allocation3 + $0x138] sm:$0xf] %v1451_v8 }
 0x200   : > { %v1306_v13 = vpop.permute.xlu1 %1305 }
 0x201   : > { %v1315_v22 = vsel %vm3876_vm10, %v1306_v13, %v1308_v44  ;;  %v1510_v0 = vpop.permute.xlu0 %1509 }
 0x202   : > { %1323 = vst [vmem:[#allocation3 + $0x100] sm:$0xf] %v1315_v22  ;;  %v1516_v37 = vsel %vm359_vm8, %v1508_v61, %v1510_v0  ;;  %v1517_v7 = vsel %vm359_vm8, %v1510_v0, %v1512_v5 }
 0x203   : > { %1524 = vst [vmem:[#allocation3 + $0x128] sm:$0xf0] %v1516_v37  ;;  %1525 = vst [vmem:[#allocation3 + $0x130] sm:$0xf0] %v1517_v7 }
 0x204   : > { %v1439_v48 = vpop.permute.xlu1 %1438 }
 0x205   : > { %v1448_v4 = vsel %vm290_vm9, %v1439_v48, %v1441_v43  ;;  %v1514_v19 = vpop.permute.xlu0 %1513 }
 0x206   : > { %1456 = vst [vmem:[#allocation3 + $0x120] sm:$0xf] %v1448_v4  ;;  %v1518_v29 = vsel %vm359_vm8, %v1512_v5, %v1514_v19 }
 0x207   : > { %1526 = vst [vmem:[#allocation3 + $0x138] sm:$0xf0] %v1518_v29 }
 0x208   : > { %v1574_v58 = vpop.permute.xlu1 %1573 }
 0x209   : > { %v1373_v15 = vpop.permute.xlu0 %1372 }
 0x20a   : > { %v1382_v49 = vsel %vm3882_vm11, %v1373_v15, %v1375_v17  ;;  %v2030_v28 = vld [vmem:[#allocation3 + $0x128] sm:$0xff]  ;;  %v2031_v54 = vld [vmem:[#allocation3 + $0x130] sm:$0xff] }
 0x20b   : > { %1390 = vst [vmem:[#allocation3 + $0x100] sm:$0xf0] %v1382_v49  ;;  %v2358_v45 = vpack.c.bf16 %v2030_v28, %v2026_v25  ;;  %v2390_v30 = vpack.c.bf16 %v2031_v54, %v2027_v23 }
 0x20c   : > { %v1578_v52 = vpop.permute.xlu1 %1577 }
 0x20d   : > { %2359 = vmatprep.subr.bf16.mxu0 %v2358_v45  ;;  %v1506_v26 = vpop.permute.xlu0 %1505 }
 0x20e   : > { %v1515_v39 = vsel %vm359_vm8, %v1506_v26, %v1508_v61  ;;  %v2032_v35 = vld [vmem:[#allocation3 + $0x138] sm:$0xff] }
 0x20f   : > { %1523 = vst [vmem:[#allocation3 + $0x120] sm:$0xf0] %v1515_v39  ;;  %v2388_v56 = vpack.c.bf16 %v2032_v35, %v2028_v62 }
 0x210   : > { %v1641_v44 = vpop.permute.xlu1 %1640 }
 0x211   : > { %2389 = vmatprep.subr.bf16.mxu1 %v2388_v56  ;;  %v1576_v1 = vpop.permute.xlu0 %1575 }
 0x212   : > { %v1582_v46 = vsel %vm427_vm7, %v1574_v58, %v1576_v1  ;;  %v1583_v31 = vsel %vm427_vm7, %v1576_v1, %v1578_v52  ;;  %2391 = vmatpush1.bf16.msra.mxu1 %v2390_v30  ;;  %v2025_v63 = vld [vmem:[#allocation3 + $0x100] sm:$0xff] }
 0x213   : > { %1590 = vst [vmem:[#allocation3 + $0x148] sm:$0xf] %v1582_v46  ;;  %1591 = vst [vmem:[#allocation3 + $0x150] sm:$0xf] %v1583_v31 }
 0x214   : > { %v1645_v51 = vpop.permute.xlu1 %1644 }
 0x215   : > { %v1580_v32 = vpop.permute.xlu0 %1579 }
 0x216   : > { %v1584_v59 = vsel %vm427_vm7, %v1578_v52, %v1580_v32  ;;  %v2029_v6 = vld [vmem:[#allocation3 + $0x120] sm:$0xff] }
 0x217   : > { %1592 = vst [vmem:[#allocation3 + $0x158] sm:$0xf] %v1584_v59  ;;  %v2360_v24 = vpack.c.bf16 %v2029_v6, %v2025_v63 }
 0x218   : > { %v1707_v12 = vpop.permute.xlu1 %1706 }
 0x219   : > { %2361 = vmatpush1.bf16.msra.mxu0 %v2360_v24  ;;  %v1643_v9 = vpop.permute.xlu0 %1642 }
 0x21a   : > { %v1649_v10 = vsel %vm496_vm6, %v1641_v44, %v1643_v9  ;;  %v1650_v34 = vsel %vm496_vm6, %v1643_v9, %v1645_v51 }
 0x21b   : > { %1657 = vst [vmem:[#allocation3 + $0x148] sm:$0xf0] %v1649_v10  ;;  %1658 = vst [vmem:[#allocation3 + $0x150] sm:$0xf0] %v1650_v34 }
 0x21c   : > { %v1711_v38 = vpop.permute.xlu1 %1710 }
 0x21d   : > { %v1647_v53 = vpop.permute.xlu0 %1646 }
 0x21e   : > { %v1651_v17 = vsel %vm496_vm6, %v1645_v51, %v1647_v53 }
 0x21f   : > { %1659 = vst [vmem:[#allocation3 + $0x158] sm:$0xf0] %v1651_v17 }
 0x220   : > { %v1774_v41 = vpop.permute.xlu1 %1773 }
 0x221   : > { %v1709_v2 = vpop.permute.xlu0 %1708 }
 0x222   : > { %v1715_v16 = vsel %vm539_vm5, %v1707_v12, %v1709_v2  ;;  %v1716_v60 = vsel %vm539_vm5, %v1709_v2, %v1711_v38  ;;  %v2034_v57 = vld [vmem:[#allocation3 + $0x148] sm:$0xff]  ;;  %v2035_v4 = vld [vmem:[#allocation3 + $0x150] sm:$0xff] }
 0x223   : > { %1723 = vst [vmem:[#allocation3 + $0x168] sm:$0xf] %v1715_v16  ;;  %1724 = vst [vmem:[#allocation3 + $0x170] sm:$0xf] %v1716_v60 }
 0x224   : > { %v1778_v14 = vpop.permute.xlu1 %1777 }
 0x225   : > { %v1713_v18 = vpop.permute.xlu0 %1712 }
 0x226   : > { %v1717_v40 = vsel %vm539_vm5, %v1711_v38, %v1713_v18  ;;  %v2036_v37 = vld [vmem:[#allocation3 + $0x158] sm:$0xff] }
 0x227   : > { %1725 = vst [vmem:[#allocation3 + $0x178] sm:$0xf] %v1717_v40 }
 0x228   : > { %v1572_v47 = vpop.permute.xlu1 %1571 }
 0x229   : > { %v1581_v27 = vsel %vm427_vm7, %v1572_v47, %v1574_v58  ;;  %v1776_v43 = vpop.permute.xlu0 %1775  ;;  %v1992_v47 = vld [vmem:[%s3852_s1] sm:$0xf] }
 0x22a   : > { %1589 = vst [vmem:[#allocation3 + $0x140] sm:$0xf] %v1581_v27  ;;  %v1782_v33 = vsel %vm470_vm3, %v1774_v41, %v1776_v43  ;;  %v1783_v21 = vsel %vm470_vm3, %v1776_v43, %v1778_v14 }
 0x22b   : > { %1790 = vst [vmem:[#allocation3 + $0x168] sm:$0xf0] %v1782_v33  ;;  %1791 = vst [vmem:[#allocation3 + $0x170] sm:$0xf0] %v1783_v21 }
 0x22c   : > { %v1705_v36 = vpop.permute.xlu1 %1704 }
 0x22d   : > { %v1714_v42 = vsel %vm539_vm5, %v1705_v36, %v1707_v12  ;;  %v1780_v11 = vpop.permute.xlu0 %1779 }
 0x22e   : > { %1722 = vst [vmem:[#allocation3 + $0x160] sm:$0xf] %v1714_v42  ;;  %v1784_v20 = vsel %vm470_vm3, %v1778_v14, %v1780_v11 }
 0x22f   : > { %1792 = vst [vmem:[#allocation3 + $0x178] sm:$0xf0] %v1784_v20 }
 0x230   : > { %v1840_v61 = vpop.permute.xlu1 %1839 }
 0x231   : > { %v1639_v55 = vpop.permute.xlu0 %1638 }
 0x232   : > { %v1648_v50 = vsel %vm496_vm6, %v1639_v55, %v1641_v44  ;;  %v2038_v5 = vld [vmem:[#allocation3 + $0x168] sm:$0xff]  ;;  %v2039_v22 = vld [vmem:[#allocation3 + $0x170] sm:$0xff] }
 0x233   : > { %1656 = vst [vmem:[#allocation3 + $0x140] sm:$0xf0] %v1648_v50  ;;  %v2362_v3 = vpack.c.bf16 %v2038_v5, %v2034_v57  ;;  %v2394_v29 = vpack.c.bf16 %v2039_v22, %v2035_v4 }
 0x234   : > { %v1844_v8 = vpop.permute.xlu1 %1843 }
 0x235   : > { %2363 = vmatprep.subr.bf16.mxu0 %v2362_v3  ;;  %v1772_v13 = vpop.permute.xlu0 %1771 }
 0x236   : > { %v1781_v0 = vsel %vm470_vm3, %v1772_v13, %v1774_v41  ;;  %v2040_v7 = vld [vmem:[#allocation3 + $0x178] sm:$0xff]  ;;  %vm2639_vm3 = vmmov 1  }
 0x237   : > { %1789 = vst [vmem:[#allocation3 + $0x160] sm:$0xf0] %v1781_v0  ;;  %v2392_v48 = vpack.c.bf16 %v2040_v7, %v2036_v37 }
 0x238   : > { %v1907_v19 = vpop.permute.xlu1 %1906 }
 0x239   : > { %2393 = vmatprep.subr.bf16.mxu1 %v2392_v48  ;;  %v1842_v58 = vpop.permute.xlu0 %1841 }
 0x23a   : > { %v1848_v15 = vsel %vm402_vm4, %v1840_v61, %v1842_v58  ;;  %v1849_v49 = vsel %vm402_vm4, %v1842_v58, %v1844_v8  ;;  %2395 = vmatpush1.bf16.msra.mxu1 %v2394_v29  ;;  %v2033_v52 = vld [vmem:[#allocation3 + $0x140] sm:$0xff] }
 0x23b   : > { %1856 = vst [vmem:[#allocation3 + $0x188] sm:$0xf] %v1848_v15  ;;  %1857 = vst [vmem:[#allocation3 + $0x190] sm:$0xf] %v1849_v49 }
 0x23c   : > { %v1911_v25 = vpop.permute.xlu1 %1910 }
 0x23d   : > { %v1846_v28 = vpop.permute.xlu0 %1845 }
 0x23e   : > { %v1850_v45 = vsel %vm402_vm4, %v1844_v8, %v1846_v28  ;;  %v2037_v26 = vld [vmem:[#allocation3 + $0x160] sm:$0xff] }
 0x23f   : > { %1858 = vst [vmem:[#allocation3 + $0x198] sm:$0xf] %v1850_v45  ;;  %v2364_v54 = vpack.c.bf16 %v2037_v26, %v2033_v52 }
 0x240   : > { %v1973_v39 = vpop.permute.xlu1 %1972 }
 0x241   : > { %2365 = vmatpush1.bf16.msra.mxu0 %v2364_v54  ;;  %v1909_v62 = vpop.permute.xlu0 %1908 }
 0x242   : > { %v1915_v35 = vsel %vm333_vm0, %v1907_v19, %v1909_v62  ;;  %v1916_v56 = vsel %vm333_vm0, %v1909_v62, %v1911_v25 }
 0x243   : > { %1923 = vst [vmem:[#allocation3 + $0x188] sm:$0xf0] %v1915_v35  ;;  %1924 = vst [vmem:[#allocation3 + $0x190] sm:$0xf0] %v1916_v56 }
 0x244   : > { %v1977_v23 = vpop.permute.xlu1 %1976 }
 0x245   : > { %v1913_v44 = vpop.permute.xlu0 %1912 }
 0x246   : > { %v1917_v30 = vsel %vm333_vm0, %v1911_v25, %v1913_v44 }
 0x247   : > { %1925 = vst [vmem:[#allocation3 + $0x198] sm:$0xf0] %v1917_v30 }
 0x248   : > { %v1838_v1 = vpop.permute.xlu1 %1837 }
 0x249   : > { %v1847_v46 = vsel %vm402_vm4, %v1838_v1, %v1840_v61  ;;  %v1975_v31 = vpop.permute.xlu0 %1974  ;;  %vm3786_vm4 = vmpackc.low %vm266_vm1, %vm2639_vm3 }
 0x24a   : > { %1855 = vst [vmem:[#allocation3 + $0x180] sm:$0xf] %v1847_v46  ;;  %v1981_v51 = vsel %vm264_vm2, %v1973_v39, %v1975_v31  ;;  %v1982_v32 = vsel %vm264_vm2, %v1975_v31, %v1977_v23  ;;  %v2042_v10 = vld [vmem:[#allocation3 + $0x188] sm:$0xff]  ;;  %v2043_v60 = vld [vmem:[#allocation3 + $0x190] sm:$0xff] }
 0x24b   : > { %1989 = vst [vmem:[#allocation3 + $0x1a8] sm:$0xf] %v1981_v51  ;;  %1990 = vst [vmem:[#allocation3 + $0x1b0] sm:$0xf] %v1982_v32 }
 0x24c   : > { %v1971_v59 = vpop.permute.xlu1 %1970 }
 0x24d   : > { %v1980_v63 = vsel %vm264_vm2, %v1971_v59, %v1973_v39  ;;  %v1979_v6 = vpop.permute.xlu0 %1978 }
 0x24e   : > { %1988 = vst [vmem:[#allocation3 + $0x1a0] sm:$0xf] %v1980_v63  ;;  %v1983_v24 = vsel %vm264_vm2, %v1977_v23, %v1979_v6  ;;  %v2044_v41 = vld [vmem:[#allocation3 + $0x198] sm:$0xff] }
 0x24f   : > { %1991 = vst [vmem:[#allocation3 + $0x1b8] sm:$0xf] %v1983_v24 }
 0x251   : > { %v1905_v12 = vpop.permute.xlu0 %1904 }
 0x252   : > { %v1914_v9 = vsel %vm333_vm0, %v1905_v12, %v1907_v19  ;;  %v2046_v34 = vld [vmem:[#allocation3 + $0x1a8] sm:$0xf]  ;;  %v2047_v17 = vld [vmem:[#allocation3 + $0x1b0] sm:$0xf]  ;;  %vm2055_vm0 = vcmask 883712  }
 0x253   : > { %1922 = vst [vmem:[#allocation3 + $0x180] sm:$0xf0] %v1914_v9  ;;  %v2366_v53 = vpack.c.bf16 %v2046_v34, %v2042_v10  ;;  %v2399_v14 = vpack.c.bf16 %v2047_v17, %v2043_v60 }
 0x255   : > { %2368 = vmatprep.subr.msk.bf16.mxu0 %vm3786_vm4, %v2366_v53  ;;  %v2045_v40 = vld [vmem:[#allocation3 + $0x1a0] sm:$0xf] }
 0x256   : > { %v2048_v2 = vld [vmem:[#allocation3 + $0x1b8] sm:$0xf] }
 0x257   : > { %v2396_v16 = vpack.c.bf16 %v2048_v2, %v2044_v41 }
 0x259   : > { %2398 = vmatprep.subr.msk.bf16.mxu1 %vm3786_vm4, %v2396_v16 }
 0x25a   : > { %2401 = vmatpush1.bf16.msk.msra.mxu1 %vm3786_vm4, %v2399_v14  ;;  %v2041_v18 = vld [vmem:[#allocation3 + $0x180] sm:$0xff] }
 0x25b   : > { %v2369_v27 = vpack.c.bf16 %v2045_v40, %v2041_v18 }
 0x25d   : > { %2371 = vmatpush1.bf16.msk.msra.mxu0 %vm3786_vm4, %v2369_v27  ;;  %2334 = vmatmul.mubr.msk.f32.vlgmr.msra.gmra.mrb[0].mxu1 %vm2055_vm0, %v1992_v47 }
 0x260   : > { %2331 = vmatmul.mubr.msk.f32.vlgmr.msra.gmra.mrb[0].mxu0 %vm2055_vm0, %v1992_v47 }
 0x262   : > { %v2053_v43 = vpop.permute.xlu0 %2052 }
 0x330   : > { %v2208_v33 = vpop.f32.mrb[0].mxu1 }
 0x331   : > { %v2210_v21 = vpop.f32.mrb[1].mxu1  ;;  %v2209_v36 = vadd.f32 %v2208_v33, %v2053_v43 }
 0x332   : > { %v2211_v42 = vadd.f32 %v2210_v21, %v2053_v43 }
 0x333   : > { %v2137_v11 = vpop.f32.mrb[0].mxu0 }
 0x334   : > { %v2138_v20 = vadd.f32 %v2137_v11, %v2053_v43  ;;  %v2218_v61 = vcombine.low %v2209_v36, %v2211_v42  ;;  %v2139_v55 = vpop.f32.mrb[1].mxu0 }
 0x335   : > { %v2140_v50 = vadd.f32 %v2139_v55, %v2053_v43 }
 0x336   : > { %2222 = vst [vmem:[%s228_s14 + $0x8] sm:$0xff] %v2218_v61 }
 0x337   : > { %v2217_v57 = vcombine.low %v2138_v20, %v2140_v50 }
 0x339   : > { %2221 = vst [vmem:[%s228_s14] sm:$0xff] %v2217_v57 }
 0x33a   : > { %2557 = shalt.err (!%p2554_p7)
}
 0x33b   : > { %s2558_s25 = scalar_lea.hbm %s3807_s7, 256  ;;  %s2562_s28 = scalar_lea.hbm %s3855_s4, 512 }
 0x33c   : > { %p2559_p9 = scmp.ne.s32.totalorder %s3807_s7, %s2558_s25  ;;  %p2563_p0 = scmp.lt.u32.totalorder %s3807_s7, %s3855_s4 }
 0x33d   : > { %p2564_p11 = scmp.lt.u32.totalorder %s2562_s28, %s2558_s25  ;;  %p2566_p4 = scmp.lt.u32.totalorder %s2558_s25, %s3807_s7 }
 0x33e   : > { %p2560_p2 = pnand %p2559_p9, %p2757_p12 }
 0x33f   : > { %p2565_p1 = por %p2564_p11, %p2563_p0 }
 0x340   : > { %p2561_p5 = pneg %p2560_p2 }
 0x341   : > { %p2567_p6 = por %p2566_p4, %p2565_p1 }
 0x343   : > { %p2568_p8 = pnand %p2567_p6, %p2561_p5 }
 0x345   : > { %2571 = shalt.err (!%p2568_p8)
}
 0x346   : > { %2408 = dma.vmem_to_hbm [thread:$0]  (%p2757_p12), %s3809_s20, 256, %s3807_s7, %s2224_s26  }
 0x347 PF: > { %s2250_s29 = sand.u32 1, %s2602_s15   ;;  %p3886_p10 = scmp.ne.s32.totalorder %s3865_s22, 0 }
 0x348   : > { %p3887_p13 = scmp.ge.s32.totalorder %s2614_s18, 2  ;;  %s2251_s10 = scalar_lea.sflag [#allocation6], %s2250_s29 }
 0x34a   : > { %p2419_p3 = pnand %p3887_p13, %p3886_p10 }
 0x34c   : > { %2597 = dma.done.wait (!%p2419_p3), %s2251_s10, 256  }
 0x34d   : > { %2599 = vsyncadd (!%p2419_p3), %s2251_s10, 4294967040  ;;  %p18_p7 = scmp.ge.s32.totalorder %s2722_s27, 4   ;;  %s3888_s15 = smov %s2606_s16 }
 0x34e   : > { %s3889_s16 = smov %s2610_s17  ;;  %s3890_s17 = smov %s2753_s24 }
 0x34f   : > { %s3891_s18 = smov %s2722_s27  ;;  %20 = sbr.rel (!%p18_p7) target bundleno = 6 (0x6), region = 110 }
 0x356   :  { %2256 = vsyncpa [#allocation5], 1 }
 0x357   :  { %2258 = vsyncpa [#allocation5 + $0x1], 1 }
 0x358   :  { %2259 = vsyncpa [#allocation8], 1 }
 0x359   :  { %2260 = vsyncpa [#allocation6], 1 }
 0x35a   :  { %2262 = vsyncpa [#allocation6 + $0x1], 1 }

</bundles_post_ra>
